<compile_context>
chip_gen: v7x
topology: tpu7x:2x2x1
jax: 0.10.0
libtpu: 0.0.40
codegen_flags: <defaults>
</compile_context>

<pallas_src>
import functools

import jax
import jax.numpy as jnp
from jax import lax
from jax.experimental import pallas as pl
from jax.experimental.pallas import tpu as pltpu


def _round_up(v, m):
    return (v + m - 1) // m * m


# ---------------------------------------------------------------------------
# Pallas kernel: fused fc6/fc7 MLP + (cls, rot) heads
# ---------------------------------------------------------------------------
def _car_cls_rot_kernel(x_ref, w6_ref, b6_ref, w7_ref, b7_ref, wh_ref, bh_ref,
                        feat_ref, head_ref, acc_ref, *, nc_pad):
    k = pl.program_id(1)
    nk = pl.num_programs(1)

    # ---- fc6: K-tiled accumulation into f32 scratch ----
    partial = jnp.dot(x_ref[...], w6_ref[...],
                      preferred_element_type=jnp.float32)

    @pl.when(k == 0)
    def _():
        acc_ref[...] = partial            # init-by-overwrite (no zero-fill pass)

    @pl.when(k > 0)
    def _():
        acc_ref[...] += partial

    # ---- epilogue on the last K step: bias/ReLU, fc7, fused heads ----
    @pl.when(k == nk - 1)
    def _():
        h6 = jnp.maximum(acc_ref[...] + b6_ref[...], 0.0)                  # [TM, H] f32

        h7 = jnp.dot(h6.astype(w7_ref.dtype), w7_ref[...],
                     preferred_element_type=jnp.float32) + b7_ref[...]
        h7 = jnp.maximum(h7, 0.0)                                          # [TM, H] f32
        feat_ref[...] = h7.astype(feat_ref.dtype)

        # Fused heads: [TM, H] x [H, nc_pad + 128] -> logits | quaternion
        hv = jnp.dot(h7.astype(wh_ref.dtype), wh_ref[...],
                     preferred_element_type=jnp.float32) + bh_ref[...]

        logits = hv[:, :nc_pad]           # pad columns carry -1e30 bias -> exp()==0
        m = jnp.max(logits, axis=-1, keepdims=True)
        e = jnp.exp(logits - m)
        probs = e / jnp.sum(e, axis=-1, keepdims=True)                     # exact softmax

        rot = hv[:, nc_pad:]              # quaternion in first 4 lanes, zeros elsewhere
        sumsq = jnp.sum(rot * rot, axis=-1, keepdims=True)
        rotn = rot * lax.rsqrt(jnp.maximum(sumsq, 1e-24))                  # == x / max(||x||,1e-12)

        # Single lane-dense output slab: [ logits | softmax | quaternion ]
        head_ref[:, :nc_pad] = logits
        head_ref[:, nc_pad:2 * nc_pad] = probs
        head_ref[:, 2 * nc_pad:] = rotn


# ---------------------------------------------------------------------------
# One-time weight preparation (hoisted out of the per-call path)
# ---------------------------------------------------------------------------
def prepare_car_cls_rot_params(params, *, block_k=1024):
    """Pad + bf16-cast the head weights ONCE at parameter-load time.

    Doing this per forward call re-reads all f32 weights and re-writes bf16
    copies through HBM on every invocation (~100 MiB for real-sized D/H),
    which would exceed the kernel's own weight streaming.
    """
    D, H = params["w6"].shape
    NC = params["wc"].shape[1]
    nc_pad = _round_up(NC, 128)
    head_pad = nc_pad + 128                      # logits block | rot block
    tk = min(_round_up(block_k, 128), _round_up(D, 128))
    Dp = _round_up(D, tk)
    bf16 = jnp.bfloat16

    w6 = params["w6"].astype(bf16)
    if Dp != D:
        w6 = jnp.pad(w6, ((0, Dp - D), (0, 0)))
    wh = (jnp.zeros((H, head_pad), bf16)
          .at[:, :NC].set(params["wc"].astype(bf16))
          .at[:, nc_pad:nc_pad + 4].set(params["wr"].astype(bf16)))
    bh = (jnp.zeros((1, head_pad), jnp.float32)
          .at[:, NC:nc_pad].set(-1e30)           # kill pad cols in softmax
          .at[:, :NC].set(params["bc"].reshape(-1))
          .at[:, nc_pad:nc_pad + 4].set(params["br"].reshape(-1)))

    return dict(
        w6=w6,
        b6=params["b6"].reshape(1, H).astype(jnp.float32),
        w7=params["w7"].astype(bf16),
        b7=params["b7"].reshape(1, H).astype(jnp.float32),
        wh=wh,
        bh=bh,
    )


def car_cls_rot_head_pallas(x_flat, weights, *, num_classes,
                            block_m=512, block_k=1024):
    """x_flat: [R, D] flattened ROI-pooled features (any float dtype).

    `weights` must come from prepare_car_cls_rot_params(..., block_k=block_k).
    """
    R, D = x_flat.shape
    Dp, H = weights["w6"].shape
    head_pad = weights["wh"].shape[1]
    nc_pad = head_pad - 128
    NC = num_classes
    out_pad = 2 * nc_pad + 128                   # logits | softmax | quaternion
    assert Dp >= D

    tk = min(_round_up(block_k, 128), Dp)
    assert Dp % tk == 0, "pass the same block_k to prepare_car_cls_rot_params"
    nk = Dp // tk

    # Row tiling: round rows up to >=128 (MXU-shaped tiles, full bf16 sublane
    # packing). Split into >=2 row tiles when there is enough work so the
    # "parallel" axis can feed v7x's second TensorCore.
    R128 = _round_up(max(R, 1), 128)
    tm = min(_round_up(block_m, 128), R128)
    if R128 >= 256 and R128 <= tm:
        tm = max(128, _round_up(R128 // 2, 128))
    Rp = _round_up(max(R, 1), tm)
    nm = Rp // tm

    bf16 = jnp.bfloat16
    xb = x_flat.astype(bf16)
    if (Rp, Dp) != (R, D):
        xb = jnp.pad(xb, ((0, Rp - R), (0, Dp - D)))

    out_shapes = (
        jax.ShapeDtypeStruct((Rp, H), jnp.float32),        # fc7 features
        jax.ShapeDtypeStruct((Rp, out_pad), jnp.float32),  # fused head slab
    )

    in_specs = [
        pl.BlockSpec((tm, tk), lambda i, k: (i, k)),       # x tile, double-buffered
        pl.BlockSpec((tk, H), lambda i, k: (k, 0)),        # w6 slab (streamed over K)
        pl.BlockSpec((1, H), lambda i, k: (0, 0)),
        pl.BlockSpec((H, H), lambda i, k: (0, 0)),         # grid-invariant (DMA'd once)
        pl.BlockSpec((1, H), lambda i, k: (0, 0)),
        pl.BlockSpec((H, head_pad), lambda i, k: (0, 0)),
        pl.BlockSpec((1, head_pad), lambda i, k: (0, 0)),
    ]
    out_specs = (
        pl.BlockSpec((tm, H), lambda i, k: (i, 0)),
        pl.BlockSpec((tm, out_pad), lambda i, k: (i, 0)),
    )

    # Explicit VMEM budget (v5e's scoped default is only 16 MiB; cap at 64 MiB
    # so v7x's physical VMEM is respected). TODO(synk): pl.Buffered(1) on the
    # grid-invariant w7/wh specs would trim another ~2x(H*H+H*head_pad)*2 B.
    vmem_bytes = (
        2 * (tm * tk + tk * H) * 2               # x / w6 slabs (double-buffered bf16)
        + 2 * (H * H + H * head_pad) * 2         # w7 / wh (default double-buffered)
        + 2 * 4 * (2 * H + 2 * head_pad)         # biases
        + 2 * 4 * tm * (H + out_pad)             # outputs (double-buffered f32)
        + 4 * tm * H                             # accumulator scratch
        + 4 * tm * (3 * H + head_pad)            # epilogue intermediates h6/h7/hv
    )
    vmem_limit = int(min(max(vmem_bytes + (8 << 20), 32 << 20), 64 << 20))

    flops = 2 * Rp * (Dp * H + H * H + H * head_pad)
    in_bytes = (2 * (xb.size + nm * Dp * H + H * H + H * head_pad)
                + 4 * (2 * H + 2 * head_pad))
    out_bytes = 4 * Rp * (H + out_pad)
    cost = pl.CostEstimate(flops=flops, transcendentals=Rp * nc_pad,
                           bytes_accessed=in_bytes + out_bytes)

    feat, head = pl.pallas_call(
        functools.partial(_car_cls_rot_kernel, nc_pad=nc_pad),
        out_shape=out_shapes,
        grid_spec=pltpu.PrefetchScalarGridSpec(
            num_scalar_prefetch=0,
            grid=(nm, nk),
            in_specs=in_specs,
            out_specs=out_specs,
            scratch_shapes=[pltpu.VMEM((tm, H), jnp.float32)],
        ),
        compiler_params=pltpu.CompilerParams(
            dimension_semantics=("parallel", "arbitrary"),
            vmem_limit_bytes=vmem_limit,
        ),
        cost_estimate=cost,
    )(xb, weights["w6"], weights["b6"], weights["w7"], weights["b7"],
      weights["wh"], weights["bh"])

    return (feat[:R],
            head[:R, :NC],
            head[:R, nc_pad:nc_pad + NC],
            head[:R, 2 * nc_pad:2 * nc_pad + 4])


# ---------------------------------------------------------------------------
# Plain-JAX glue: single-level ROIAlign (sampling_ratio=1 simplification)
# ---------------------------------------------------------------------------
# TODO(synk): multi-level FPN ROIAlign is a data-dependent gather; a
# PrefetchScalarGridSpec gather kernel fused with fc6 would avoid the [R,C,H,W]
# HBM copy, kept as plain-JAX here.
def roi_align(features, rois, output_size, spatial_scale):
    """features: [N, C, H, W]; rois: [R, 5] = (batch_idx, x1, y1, x2, y2)."""
    N, C, H, W = features.shape
    P = output_size
    batch_idx = rois[:, 0].astype(jnp.int32)
    x1 = rois[:, 1] * spatial_scale
    y1 = rois[:, 2] * spatial_scale
    x2 = rois[:, 3] * spatial_scale
    y2 = rois[:, 4] * spatial_scale
    roi_w = jnp.maximum(x2 - x1, 1.0)
    roi_h = jnp.maximum(y2 - y1, 1.0)
    ys = y1[:, None] + (jnp.arange(P, dtype=jnp.float32) + 0.5)[None, :] * (roi_h / P)[:, None]
    xs = x1[:, None] + (jnp.arange(P, dtype=jnp.float32) + 0.5)[None, :] * (roi_w / P)[:, None]
    fm = jnp.take(features, batch_idx, axis=0)                 # [R, C, H, W]

    def sample_roi(fm_r, ys_r, xs_r):
        y0 = jnp.floor(ys_r)
        x0 = jnp.floor(xs_r)
        y0i = jnp.clip(y0, 0, H - 1).astype(jnp.int32)
        y1i = jnp.clip(y0 + 1, 0, H - 1).astype(jnp.int32)
        x0i = jnp.clip(x0, 0, W - 1).astype(jnp.int32)
        x1i = jnp.clip(x0 + 1, 0, W - 1).astype(jnp.int32)
        ly = (ys_r - y0)[:, None]
        lx = (xs_r - x0)[None, :]
        hy, hx = 1.0 - ly, 1.0 - lx
        v00 = fm_r[:, y0i][:, :, x0i]
        v01 = fm_r[:, y0i][:, :, x1i]
        v10 = fm_r[:, y1i][:, :, x0i]
        v11 = fm_r[:, y1i][:, :, x1i]
        return v00 * hy * hx + v01 * hy * lx + v10 * ly * hx + v11 * ly * lx

    return jax.vmap(sample_roi)(fm, ys, xs)                    # [R, C, P, P]


def make_params(key, in_dim, hidden, num_car_classes):
    ks = jax.random.split(key, 8)
    s = 0.02
    return dict(
        w6=s * jax.random.normal(ks[0], (in_dim, hidden), jnp.float32),
        b6=jnp.zeros((1, hidden), jnp.float32),
        w7=s * jax.random.normal(ks[1], (hidden, hidden), jnp.float32),
        b7=jnp.zeros((1, hidden), jnp.float32),
        wc=s * jax.random.normal(ks[2], (hidden, num_car_classes), jnp.float32),
        bc=s * jax.random.normal(ks[3], (1, num_car_classes), jnp.float32),
        wr=s * jax.random.normal(ks[4], (hidden, 4), jnp.float32),
        br=s * jax.random.normal(ks[5], (1, 4), jnp.float32),
    )


def roi_car_cls_rot_head_forward(features, rois, weights, *, num_car_classes,
                                 pooled_size, spatial_scale,
                                 block_m=512, block_k=1024):
    """Eval-mode forward of ROICarClsRotHead (weights pre-prepared)."""
    pooled = roi_align(features, rois, pooled_size, spatial_scale)    # [R, C, P, P]
    R = pooled.shape[0]
    x_flat = pooled.reshape(R, -1).astype(jnp.bfloat16)               # bf16 straight out of pooling
    x, cls_score, cls, rot_pred = car_cls_rot_head_pallas(
        x_flat, weights, num_classes=num_car_classes,
        block_m=block_m, block_k=block_k)
    # post_processor glue: attach predictions to the proposals
    result = dict(boxes=rois[:, 1:], batch_idx=rois[:, 0].astype(jnp.int32),
                  cls_score=cls_score, cls=cls, rot_pred=rot_pred)
    # TODO(synk): training branch (keep_only_positive_boxes, loss_evaluator) is
    # data-dependent BoxList bookkeeping with no kernel hot path; not implemented.
    return x, result, {}


if __name__ == "__main__":
    key = jax.random.PRNGKey(0)
    k_feat, k_box, k_par = jax.random.split(key, 3)

    # Small synthetic config
    N, C, Hf, Wf = 2, 4, 16, 16            # feature maps, NCHW
    POOL = 8                               # ROIAlign output resolution
    SPATIAL_SCALE = 0.25                   # image 64x64 -> feature 16x16
    HIDDEN = 128                           # MLP_HEAD_DIM
    NUM_CAR_CLASSES = 8                    # CAR_NUM_CLASSES (small)
    R_PER_IMG = 4
    BLOCK_K = 128                          # exercises the K-tiled fc6 path (D=256 -> nk=2)

    features = jax.random.normal(k_feat, (N, C, Hf, Wf), jnp.float32)

    # Deterministic proposals: (batch_idx, x1, y1, x2, y2) in image coords (64x64)
    bxy = 8.0 + 40.0 * jax.random.uniform(k_box, (N * R_PER_IMG, 2))
    wh = 8.0 + 16.0 * jax.random.uniform(jax.random.fold_in(k_box, 1), (N * R_PER_IMG, 2))
    x1y1 = bxy
    x2y2 = jnp.minimum(bxy + wh, 63.0)
    batch_idx = jnp.repeat(jnp.arange(N, dtype=jnp.float32), R_PER_IMG)[:, None]
    rois = jnp.concatenate([batch_idx, x1y1, x2y2], axis=1)          # [8, 5]

    params = make_params(k_par, C * POOL * POOL, HIDDEN, NUM_CAR_CLASSES)
    # Weight pad/cast done ONCE here (hoisted out of the per-call path).
    weights = jax.tree_util.tree_map(
        jax.block_until_ready, prepare_car_cls_rot_params(params, block_k=BLOCK_K))

    fwd = jax.jit(functools.partial(roi_car_cls_rot_head_forward,
                                    num_car_classes=NUM_CAR_CLASSES,
                                    pooled_size=POOL, spatial_scale=SPATIAL_SCALE,
                                    block_m=512, block_k=BLOCK_K))
    x, result, losses = fwd(features, rois, weights)
    jax.block_until_ready((x, result))

    # Reference check (pure JAX, same bf16 weight/activation casts as the kernel)
    bf16 = jnp.bfloat16
    pooled = roi_align(features, rois, POOL, SPATIAL_SCALE).reshape(rois.shape[0], -1)
    xb = pooled.astype(bf16)
    h = jnp.maximum(jnp.dot(xb, params["w6"].astype(bf16),
                            preferred_element_type=jnp.float32) + params["b6"], 0.0)
    h = jnp.maximum(jnp.dot(h.astype(bf16), params["w7"].astype(bf16),
                            preferred_element_type=jnp.float32) + params["b7"], 0.0)
    logits = jnp.dot(h.astype(bf16), params["wc"].astype(bf16),
                     preferred_element_type=jnp.float32) + params["bc"]
    probs = jax.nn.softmax(logits, axis=-1)
    rot = jnp.dot(h.astype(bf16), params["wr"].astype(bf16),
                  preferred_element_type=jnp.float32) + params["br"]
    rot = rot / jnp.maximum(jnp.linalg.norm(rot, axis=-1, keepdims=True), 1e-12)

    assert jnp.allclose(x, h, atol=2e-3), float(jnp.max(jnp.abs(x - h)))
    assert jnp.allclose(result["cls_score"], logits, atol=2e-3)
    assert jnp.allclose(result["cls"], probs, atol=2e-3)
    assert jnp.allclose(result["rot_pred"], rot, atol=2e-3)

    print("KERNEL_OK")
</pallas_src>

<mosaic_0001>
module attributes {stable_mosaic.version = 11 : i64} {
  func.func @_car_cls_rot_kernel(%arg0: i32, %arg1: i32, %arg2: memref<128x128xbf16, #tpu.memory_space<vmem>>, %arg3: memref<128x128xbf16, #tpu.memory_space<vmem>>, %arg4: memref<1x128xf32, #tpu.memory_space<vmem>>, %arg5: memref<128x128xbf16, #tpu.memory_space<vmem>>, %arg6: memref<1x128xf32, #tpu.memory_space<vmem>>, %arg7: memref<128x256xbf16, #tpu.memory_space<vmem>>, %arg8: memref<1x256xf32, #tpu.memory_space<vmem>>, %arg9: memref<128x128xf32, #tpu.memory_space<vmem>>, %arg10: memref<128x384xf32, #tpu.memory_space<vmem>>, %arg11: memref<128x128xf32, #tpu.memory_space<vmem>>) attributes {dimension_semantics = [#tpu.dimension_semantics<parallel>, #tpu.dimension_semantics<arbitrary>], iteration_bounds = array<i64: 1, 2>, scalar_prefetch = 0 : i64, scratch_operands = 1 : i64, tpu.core_type = #tpu.core_type<tc>, window_params = [{transform_indices = @transform_0, window_bounds = array<i64: 128, 128>}, {transform_indices = @transform_1, window_bounds = array<i64: 128, 128>}, {pipeline_mode = #tpu.pipeline_mode<synchronous>, transform_indices = @transform_2, window_bounds = array<i64: 1, 128>}, {pipeline_mode = #tpu.pipeline_mode<synchronous>, transform_indices = @transform_3, window_bounds = array<i64: 128, 128>}, {pipeline_mode = #tpu.pipeline_mode<synchronous>, transform_indices = @transform_4, window_bounds = array<i64: 1, 128>}, {pipeline_mode = #tpu.pipeline_mode<synchronous>, transform_indices = @transform_5, window_bounds = array<i64: 128, 256>}, {pipeline_mode = #tpu.pipeline_mode<synchronous>, transform_indices = @transform_6, window_bounds = array<i64: 1, 256>}, {transform_indices = @transform_7, window_bounds = array<i64: 128, 128>}, {transform_indices = @transform_8, window_bounds = array<i64: 128, 384>}]} {
    %c0 = arith.constant 0 : index
    %c0_0 = arith.constant 0 : index
    %0 = vector.load %arg2[%c0, %c0_0] : memref<128x128xbf16, #tpu.memory_space<vmem>>, vector<128x128xbf16>
    %c0_1 = arith.constant 0 : index
    %c0_2 = arith.constant 0 : index
    %1 = vector.load %arg3[%c0_1, %c0_2] : memref<128x128xbf16, #tpu.memory_space<vmem>>, vector<128x128xbf16>
    %cst = arith.constant dense<0.000000e+00> : vector<128x128xf32>
    %2 = tpu.matmul %0, %1, %cst {dimension_numbers = #tpu.dot_dimension_numbers<[1], [0], [0], [1], [0, 0, 1, 1], [], []>} : vector<128x128xbf16>, vector<128x128xbf16>, vector<128x128xf32> -> vector<128x128xf32>
    %c0_i32 = arith.constant 0 : i32
    %3 = arith.cmpi eq, %arg1, %c0_i32 : i32
    %4 = arith.extui %3 : i1 to i32
    %c0_i32_3 = arith.constant 0 : i32
    %5 = arith.cmpi ne, %4, %c0_i32_3 : i32
    scf.if %5 {
      %c0_7 = arith.constant 0 : index
      %c0_8 = arith.constant 0 : index
      %12 = vector.load %arg11[%c0_7, %c0_8] : memref<128x128xf32, #tpu.memory_space<vmem>>, vector<128x128xf32>
      tpu.vector_store %arg11[%c0_7, %c0_8], %2 {strides = array<i32>} : memref<128x128xf32, #tpu.memory_space<vmem>>, vector<128x128xf32>,
    } else {
    }
    %c0_i32_4 = arith.constant 0 : i32
    %6 = arith.cmpi sgt, %arg1, %c0_i32_4 : i32
    %7 = arith.extui %6 : i1 to i32
    %c0_i32_5 = arith.constant 0 : i32
    %8 = arith.cmpi ne, %7, %c0_i32_5 : i32
    scf.if %8 {
      %c0_7 = arith.constant 0 : index
      %c0_8 = arith.constant 0 : index
      %12 = vector.load %arg11[%c0_7, %c0_8] : memref<128x128xf32, #tpu.memory_space<vmem>>, vector<128x128xf32>
      %13 = arith.addf %12, %2 : vector<128x128xf32>
      %c0_9 = arith.constant 0 : index
      %c0_10 = arith.constant 0 : index
      %14 = vector.load %arg11[%c0_9, %c0_10] : memref<128x128xf32, #tpu.memory_space<vmem>>, vector<128x128xf32>
      tpu.vector_store %arg11[%c0_9, %c0_10], %13 {strides = array<i32>} : memref<128x128xf32, #tpu.memory_space<vmem>>, vector<128x128xf32>,
    } else {
    }
    %c1_i32 = arith.constant 1 : i32
    %9 = arith.cmpi eq, %arg1, %c1_i32 : i32
    %10 = arith.extui %9 : i1 to i32
    %c0_i32_6 = arith.constant 0 : i32
    %11 = arith.cmpi ne, %10, %c0_i32_6 : i32
    scf.if %11 {
      %c0_7 = arith.constant 0 : index
      %c0_8 = arith.constant 0 : index
      %12 = vector.load %arg11[%c0_7, %c0_8] : memref<128x128xf32, #tpu.memory_space<vmem>>, vector<128x128xf32>
      %c0_9 = arith.constant 0 : index
      %c0_10 = arith.constant 0 : index
      %13 = vector.load %arg4[%c0_9, %c0_10] : memref<1x128xf32, #tpu.memory_space<vmem>>, vector<1x128xf32>
      %14 = vector.broadcast %13 : vector<1x128xf32> to vector<128x128xf32>
      %15 = arith.addf %12, %14 : vector<128x128xf32>
      %cst_11 = arith.constant 0.000000e+00 : f32
      %16 = vector.broadcast %cst_11 : f32 to vector<128x128xf32>
      %17 = arith.maximumf %15, %16 : vector<128x128xf32>
      %18 = arith.truncf %17 : vector<128x128xf32> to vector<128x128xbf16>
      %c0_12 = arith.constant 0 : index
      %c0_13 = arith.constant 0 : index
      %19 = vector.load %arg5[%c0_12, %c0_13] : memref<128x128xbf16, #tpu.memory_space<vmem>>, vector<128x128xbf16>
      %cst_14 = arith.constant dense<0.000000e+00> : vector<128x128xf32>
      %20 = tpu.matmul %18, %19, %cst_14 {dimension_numbers = #tpu.dot_dimension_numbers<[1], [0], [0], [1], [0, 0, 1, 1], [], []>} : vector<128x128xbf16>, vector<128x128xbf16>, vector<128x128xf32> -> vector<128x128xf32>
      %c0_15 = arith.constant 0 : index
      %c0_16 = arith.constant 0 : index
      %21 = vector.load %arg6[%c0_15, %c0_16] : memref<1x128xf32, #tpu.memory_space<vmem>>, vector<1x128xf32>
      %22 = vector.broadcast %21 : vector<1x128xf32> to vector<128x128xf32>
      %23 = arith.addf %20, %22 : vector<128x128xf32>
      %cst_17 = arith.constant 0.000000e+00 : f32
      %24 = vector.broadcast %cst_17 : f32 to vector<128x128xf32>
      %25 = arith.maximumf %23, %24 : vector<128x128xf32>
      %c0_18 = arith.constant 0 : index
      %c0_19 = arith.constant 0 : index
      %26 = vector.load %arg9[%c0_18, %c0_19] : memref<128x128xf32, #tpu.memory_space<vmem>>, vector<128x128xf32>
      tpu.vector_store %arg9[%c0_18, %c0_19], %25 {strides = array<i32>} : memref<128x128xf32, #tpu.memory_space<vmem>>, vector<128x128xf32>,
      %27 = arith.truncf %25 : vector<128x128xf32> to vector<128x128xbf16>
      %c0_20 = arith.constant 0 : index
      %c0_21 = arith.constant 0 : index
      %28 = vector.load %arg7[%c0_20, %c0_21] : memref<128x256xbf16, #tpu.memory_space<vmem>>, vector<128x256xbf16>
      %cst_22 = arith.constant dense<0.000000e+00> : vector<128x256xf32>
      %29 = tpu.matmul %27, %28, %cst_22 {dimension_numbers = #tpu.dot_dimension_numbers<[1], [0], [0], [1], [0, 0, 1, 1], [], []>} : vector<128x128xbf16>, vector<128x256xbf16>, vector<128x256xf32> -> vector<128x256xf32>
      %c0_23 = arith.constant 0 : index
      %c0_24 = arith.constant 0 : index
      %30 = vector.load %arg8[%c0_23, %c0_24] : memref<1x256xf32, #tpu.memory_space<vmem>>, vector<1x256xf32>
      %31 = vector.broadcast %30 : vector<1x256xf32> to vector<128x256xf32>
      %32 = arith.addf %29, %31 : vector<128x256xf32>
      %33 = vector.extract_strided_slice %32 {offsets = [0, 0], sizes = [128, 128], strides = [1, 1]} : vector<128x256xf32> to vector<128x128xf32>
      %cst_25 = arith.constant dense<0xFF800000> : vector<128xf32>
      %34 = vector.multi_reduction <maximumf>, %33, %cst_25 [1] : vector<128x128xf32> to vector<128xf32>
      %35 = vector.shape_cast %34 : vector<128xf32> to vector<128x1xf32>
      %36 = vector.broadcast %35 : vector<128x1xf32> to vector<128x128xf32>
      %37 = arith.subf %33, %36 : vector<128x128xf32>
      %38 = math.exp %37 : vector<128x128xf32>
      %cst_26 = arith.constant dense<0.000000e+00> : vector<128xf32>
      %39 = vector.multi_reduction <add>, %38, %cst_26 [1] : vector<128x128xf32> to vector<128xf32>
      %40 = vector.shape_cast %39 : vector<128xf32> to vector<128x1xf32>
      %41 = vector.broadcast %40 : vector<128x1xf32> to vector<128x128xf32>
      %42 = arith.divf %38, %41 : vector<128x128xf32>
      %43 = vector.extract_strided_slice %32 {offsets = [0, 128], sizes = [128, 128], strides = [1, 1]} : vector<128x256xf32> to vector<128x128xf32>
      %44 = arith.mulf %43, %43 : vector<128x128xf32>
      %cst_27 = arith.constant dense<0.000000e+00> : vector<128xf32>
      %45 = vector.multi_reduction <add>, %44, %cst_27 [1] : vector<128x128xf32> to vector<128xf32>
      %46 = vector.shape_cast %45 : vector<128xf32> to vector<128x1xf32>
      %cst_28 = arith.constant 1.000000e-24 : f32
      %47 = vector.broadcast %cst_28 : f32 to vector<128x1xf32>
      %48 = arith.maximumf %46, %47 : vector<128x1xf32>
      %49 = math.rsqrt %48 : vector<128x1xf32>
      %50 = vector.broadcast %49 : vector<128x1xf32> to vector<128x128xf32>
      %51 = arith.mulf %43, %50 : vector<128x128xf32>
      %c0_29 = arith.constant 0 : index
      %c0_30 = arith.constant 0 : index
      %52 = vector.load %arg10[%c0_29, %c0_30] : memref<128x384xf32, #tpu.memory_space<vmem>>, vector<128x128xf32>
      tpu.vector_store %arg10[%c0_29, %c0_30], %33 {strides = array<i32>} : memref<128x384xf32, #tpu.memory_space<vmem>>, vector<128x128xf32>,
      %c0_31 = arith.constant 0 : index
      %c128 = arith.constant 128 : index
      %53 = vector.load %arg10[%c0_31, %c128] : memref<128x384xf32, #tpu.memory_space<vmem>>, vector<128x128xf32>
      tpu.vector_store %arg10[%c0_31, %c128], %42 {strides = array<i32>} : memref<128x384xf32, #tpu.memory_space<vmem>>, vector<128x128xf32>,
      %c0_32 = arith.constant 0 : index
      %c256 = arith.constant 256 : index
      %54 = vector.load %arg10[%c0_32, %c256] : memref<128x384xf32, #tpu.memory_space<vmem>>, vector<128x128xf32>
      tpu.vector_store %arg10[%c0_32, %c256], %51 {strides = array<i32>} : memref<128x384xf32, #tpu.memory_space<vmem>>, vector<128x128xf32>,
    } else {
    }
    return
  }
  func.func @transform_0(%arg0: i32, %arg1: i32) -> (i32, i32) {
    %c0_i32 = arith.constant 0 : i32
    return %arg0, %arg1 : i32, i32
  }
  func.func @transform_1(%arg0: i32, %arg1: i32) -> (i32, i32) {
    %c0_i32 = arith.constant 0 : i32
    %c0_i32_0 = arith.constant 0 : i32
    return %arg1, %c0_i32 : i32, i32
  }
  func.func @transform_2(%arg0: i32, %arg1: i32) -> (i32, i32) {
    %c0_i32 = arith.constant 0 : i32
    %c0_i32_0 = arith.constant 0 : i32
    %c0_i32_1 = arith.constant 0 : i32
    return %c0_i32, %c0_i32_0 : i32, i32
  }
  func.func @transform_3(%arg0: i32, %arg1: i32) -> (i32, i32) {
    %c0_i32 = arith.constant 0 : i32
    %c0_i32_0 = arith.constant 0 : i32
    %c0_i32_1 = arith.constant 0 : i32
    return %c0_i32, %c0_i32_0 : i32, i32
  }
  func.func @transform_4(%arg0: i32, %arg1: i32) -> (i32, i32) {
    %c0_i32 = arith.constant 0 : i32
    %c0_i32_0 = arith.constant 0 : i32
    %c0_i32_1 = arith.constant 0 : i32
    return %c0_i32, %c0_i32_0 : i32, i32
  }
  func.func @transform_5(%arg0: i32, %arg1: i32) -> (i32, i32) {
    %c0_i32 = arith.constant 0 : i32
    %c0_i32_0 = arith.constant 0 : i32
    %c0_i32_1 = arith.constant 0 : i32
    return %c0_i32, %c0_i32_0 : i32, i32
  }
  func.func @transform_6(%arg0: i32, %arg1: i32) -> (i32, i32) {
    %c0_i32 = arith.constant 0 : i32
    %c0_i32_0 = arith.constant 0 : i32
    %c0_i32_1 = arith.constant 0 : i32
    return %c0_i32, %c0_i32_0 : i32, i32
  }
  func.func @transform_7(%arg0: i32, %arg1: i32) -> (i32, i32) {
    %c0_i32 = arith.constant 0 : i32
    %c0_i32_0 = arith.constant 0 : i32
    return %arg0, %c0_i32 : i32, i32
  }
  func.func @transform_8(%arg0: i32, %arg1: i32) -> (i32, i32) {
    %c0_i32 = arith.constant 0 : i32
    %c0_i32_0 = arith.constant 0 : i32
    return %arg0, %c0_i32 : i32, i32
  }
}

</mosaic_0001>

<bundles_post_ra>
// kernel: roi_car_cls_rot_head_forward.1
= control target key start
LH: loop header
LB: loop body
LE: loop exit
PB: predicated region body
PF: predicated region fallthrough
CT: control target
= control target key end

     0   :  { %s2120_s27 = smov 0   ;;  %s2122_s28 = smov 0   ;;  %s2837_s0 = inlined_call_operand.vmem [shape: bf16[128,256], index: 0, kind: input, shape index: {}]   ;;  %s2838_s1 = inlined_call_operand.vmem [shape: bf16[256,128], index: 1, kind: input, shape index: {}]   ;;  %s2839_s2 = inlined_call_operand.vmem [shape: f32[1,128], index: 2, kind: input, shape index: {}]   ;;  %s2840_s3 = inlined_call_operand.vmem [shape: bf16[128,128], index: 3, kind: input, shape index: {}]   ;;  %s2841_s4 = inlined_call_operand.vmem [shape: f32[1,128], index: 4, kind: input, shape index: {}]   ;;  %s2842_s5 = inlined_call_operand.vmem [shape: bf16[128,256], index: 5, kind: input, shape index: {}]   ;;  %s2843_s6 = inlined_call_operand.vmem [shape: f32[1,256], index: 6, kind: input, shape index: {}]   ;;  %s2844_s7 = inlined_call_operand.vmem [shape: f32[128,128], index: 7, kind: output, shape index: {0}]   ;;  %s2845_s8 = inlined_call_operand.vmem [shape: f32[128,384], index: 8, kind: output, shape index: {1}]  }
   0x1   :  { %s2124_s29 = smov 0   ;;  %s2126_s30 = smov 0  }
   0x2   :  { %s2128_s9 = smov 0  }
   0x3 LB: > { %s28_s10 = sadd.s32 1, %s2068_s30  ;;  %p47_p1 = scmp.ne.s32.totalorder %s2060_s28, %s2056_s27  ;;  %s2072_s9 = sphi %s2128_s9, %s19_s9   ;;  %s2068_s30 = sphi %s2126_s30, %s2849_s30   ;;  %s2064_s29 = sphi %s2124_s29, %s2848_s29   ;;  %s2060_s28 = sphi %s2122_s28, %s2847_s28   ;;  %s2056_s27 = sphi %s2120_s27, %s2846_s27  }
   0x4   : > { %p29_p0 = scmp.ge.s32.totalorder %s28_s10, 2  ;;  %p48_p2 = scmp.eq.s32.totalorder %s2072_s9, 0 }
   0x5   : > { %s40_s12 = sadd.s32 1, %s2060_s28  ;;  %p1663_p5 = scmp.ge.s32.totalorder %s2072_s9, 2 }
   0x6   : > { %s2851_s10 = smov (%p29_p0, %s28_s10), 0  ;;  %p49_p3 = por %p48_p2, %p47_p1 }
   0x7   : > { %s36_s11 = ssub.s32 %s2068_s30, %s2851_s10  ;;  %271 = sbr.rel (%p1663_p5) target bundleno = 28 (0x1c), region = 36 }
   0x8   : > { %p38_p4 = scmp.eq.s32.totalorder %s36_s11, 0 }
   0xa   : > { %s2155_s13 = scalar_select %p38_p4, %s2060_s28, %s40_s12  }
   0xe   : > { %274 = sbr.rel (!%p49_p3) target bundleno = 28 (0x1c), region = 40  ;;  %s276_s14 = sand.u32 (%p49_p3), 1, %s2060_s28  }
   0xf   : > { %s1665_s15 = sshll.u32 (%p49_p3), %s2068_s30, 2  ;;  %s1664_s16 = sshll.u32 (%p49_p3), %s276_s14, 6 }
  0x10   : > { %s2163_s19 = scalar_lea.vmem (%p49_p3), %s2837_s0, %s1665_s15  ;;  %s278_s20 = scalar_lea.vmem (%p49_p3), [#allocation3], %s1664_s16 }
  0x11   : > { %v299_v0 = vld [vmem:[%s2163_s19] sm:$0xf] (%p49_p3)  ;;  %v301_v1 = vld [vmem:[%s2163_s19 + $0x8] sm:$0xf] (%p49_p3)  ;;  %v303_v2 = vld [vmem:[%s2163_s19 + $0x10] sm:$0xf] (%p49_p3) }
  0x12   : > { %300 = vst [vmem:[%s278_s20] sm:$0xf] (%p49_p3), %v299_v0  ;;  %302 = vst [vmem:[%s278_s20 + $0x4] sm:$0xf] (%p49_p3), %v301_v1  ;;  %v305_v3 = vld [vmem:[%s2163_s19 + $0x18] sm:$0xf] (%p49_p3) }
  0x13   : > { %v307_v4 = vld [vmem:[%s2163_s19 + $0x20] sm:$0xf] (%p49_p3)  ;;  %304 = vst [vmem:[%s278_s20 + $0x8] sm:$0xf] (%p49_p3), %v303_v2  ;;  %306 = vst [vmem:[%s278_s20 + $0xc] sm:$0xf] (%p49_p3), %v305_v3 }
  0x14   : > { %308 = vst [vmem:[%s278_s20 + $0x10] sm:$0xf] (%p49_p3), %v307_v4  ;;  %v309_v5 = vld [vmem:[%s2163_s19 + $0x28] sm:$0xf] (%p49_p3)  ;;  %v311_v6 = vld [vmem:[%s2163_s19 + $0x30] sm:$0xf] (%p49_p3) }
  0x15   : > { %v313_v7 = vld [vmem:[%s2163_s19 + $0x38] sm:$0xf]  ;;  %310 = vst [vmem:[%s278_s20 + $0x14] sm:$0xf] %v309_v5  ;;  %312 = vst [vmem:[%s278_s20 + $0x18] sm:$0xf] %v311_v6 }
  0x16   : > { %314 = vst [vmem:[%s278_s20 + $0x1c] sm:$0xf] %v313_v7  ;;  %v315_v8 = vld [vmem:[%s2163_s19 + $0x40] sm:$0xf]  ;;  %v317_v9 = vld [vmem:[%s2163_s19 + $0x48] sm:$0xf] }
  0x17   : > { %v319_v10 = vld [vmem:[%s2163_s19 + $0x50] sm:$0xf]  ;;  %316 = vst [vmem:[%s278_s20 + $0x20] sm:$0xf] %v315_v8  ;;  %318 = vst [vmem:[%s278_s20 + $0x24] sm:$0xf] %v317_v9 }
  0x18   : > { %320 = vst [vmem:[%s278_s20 + $0x28] sm:$0xf] %v319_v10  ;;  %v321_v11 = vld [vmem:[%s2163_s19 + $0x58] sm:$0xf]  ;;  %v323_v12 = vld [vmem:[%s2163_s19 + $0x60] sm:$0xf] }
  0x19   : > { %v325_v13 = vld [vmem:[%s2163_s19 + $0x68] sm:$0xf]  ;;  %322 = vst [vmem:[%s278_s20 + $0x2c] sm:$0xf] %v321_v11  ;;  %324 = vst [vmem:[%s278_s20 + $0x30] sm:$0xf] %v323_v12 }
  0x1a   : > { %326 = vst [vmem:[%s278_s20 + $0x34] sm:$0xf] %v325_v13  ;;  %v327_v14 = vld [vmem:[%s2163_s19 + $0x70] sm:$0xf]  ;;  %v329_v15 = vld [vmem:[%s2163_s19 + $0x78] sm:$0xf] }
  0x1b   : > { %328 = vst [vmem:[%s278_s20 + $0x38] sm:$0xf] %v327_v14  ;;  %330 = vst [vmem:[%s278_s20 + $0x3c] sm:$0xf] %v329_v15 }
  0x1c PF: > { %p1666_p6 = scmp.ge.s32.totalorder %s2072_s9, 1  ;;  %p393_p7 = scmp.lt.s32.totalorder %s2072_s9, 3 }
  0x1e   : > { %p394_p8 = pnand %p1666_p6, %p393_p7 }
  0x1f   : > { %s1668_s21 = sshll.u32 (!%p394_p8), %s2064_s29, 4  ;;  %s400_s22 = sand.u32 (!%p394_p8), 1, %s2056_s27  }
  0x20   : > { %397 = sbr.rel (%p394_p8) target bundleno = 1144 (0x478), region = 85  ;;  %p446_p9 = scmp.lt.s32.totalorder (!%p394_p8), %s1668_s21, 31 }
  0x21   : > { %s1667_s23 = sshll.u32 (!%p394_p8), %s400_s22, 6  ;;  %p1686_p10 = scmp.ne.s32.totalorder (!%p394_p8), %s2064_s29, 0 }
  0x22   : > { %s2185_s24 = scalar_lea.vmem (!%p394_p8), [#allocation3], %s1667_s23 }
  0x23   : > { %v1898_v16 = vld [vmem:[%s2185_s24] sm:$0xff] (!%p394_p8)   ;;  %v1900_v26 = vld [vmem:[%s2185_s24 + $0x8] sm:$0xff] (!%p394_p8)   ;;  %v1902_v28 = vld [vmem:[%s2185_s24 + $0x10] sm:$0xff] (!%p394_p8)  }
  0x24   : > { %v1899_v17 = vld [vmem:[%s2185_s24 + $0x20] sm:$0xff] (!%p394_p8)   ;;  %1769 = vmatprep.mubr.bf16.mxu0 (!%p394_p8), %v1898_v16  ;;  %v1901_v27 = vld [vmem:[%s2185_s24 + $0x28] sm:$0xff] (!%p394_p8)   ;;  %v1903_v29 = vld [vmem:[%s2185_s24 + $0x30] sm:$0xff] (!%p394_p8)  }
  0x25   : > { %1777 = vmatprep.mubr.bf16.mxu1 (!%p394_p8), %v1899_v17  ;;  %v1904_v30 = vld [vmem:[%s2185_s24 + $0x18] sm:$0xff] (!%p394_p8)  }
  0x26   : > { %v1905_v31 = vld [vmem:[%s2185_s24 + $0x38] sm:$0xff] (!%p394_p8)  }
  0x27   : > { %s2853_s21 = smov (!%p446_p9, %s1668_s21), 31 }
  0x28   : > { %s1669_s25 = sshll.u32 %s2853_s21, 2 }
  0x29   : > { %s2192_s12 = scalar_lea.vmem %s2838_s1, %s1669_s25 }
  0x2a   : > { %v1890_v18 = vld [vmem:[%s2192_s12] sm:$0xff]   ;;  %v1891_v19 = vld [vmem:[%s2192_s12 + $0x8] sm:$0xff]   ;;  %v1892_v20 = vld [vmem:[%s2192_s12 + $0x10] sm:$0xff]  }
  0x2b   : > { %1753 = vmatprep.subr.bf16.mxu0 %v1890_v18  ;;  %1817 = vmatprep.subr.bf16.mxu1 %v1890_v18  ;;  %v1893_v21 = vld [vmem:[%s2192_s12 + $0x18] sm:$0xff]   ;;  %v1894_v22 = vld [vmem:[%s2192_s12 + $0x20] sm:$0xff]   ;;  %v1895_v23 = vld [vmem:[%s2192_s12 + $0x28] sm:$0xff]  }
  0x2c   : > { %1754 = vmatpush3.bf16.msra.mxu0 %v1890_v18  ;;  %1825 = vmatpush3.bf16.msra.mxu1 %v1890_v18  ;;  %v1896_v24 = vld [vmem:[%s2192_s12 + $0x30] sm:$0xff]   ;;  %v1897_v25 = vld [vmem:[%s2192_s12 + $0x38] sm:$0xff]  }
  0x2d   : > { %1755 = vmatprep.subr.bf16.mxu0 %v1891_v19  ;;  %1818 = vmatprep.subr.bf16.mxu1 %v1891_v19 }
  0x30   : > { %1756 = vmatpush3.bf16.msra.mxu0 %v1891_v19  ;;  %1826 = vmatpush3.bf16.msra.mxu1 %v1891_v19 }
  0x31   : > { %1757 = vmatprep.subr.bf16.mxu0 %v1892_v20  ;;  %1819 = vmatprep.subr.bf16.mxu1 %v1892_v20 }
  0x34   : > { %1758 = vmatpush3.bf16.msra.mxu0 %v1892_v20  ;;  %1827 = vmatpush3.bf16.msra.mxu1 %v1892_v20 }
  0x35   : > { %1759 = vmatprep.subr.bf16.mxu0 %v1893_v21  ;;  %1820 = vmatprep.subr.bf16.mxu1 %v1893_v21 }
  0x38   : > { %1760 = vmatpush3.bf16.msra.mxu0 %v1893_v21  ;;  %1828 = vmatpush3.bf16.msra.mxu1 %v1893_v21 }
  0x39   : > { %1761 = vmatprep.subr.bf16.mxu0 %v1894_v22  ;;  %1821 = vmatprep.subr.bf16.mxu1 %v1894_v22 }
  0x3c   : > { %1762 = vmatpush3.bf16.msra.mxu0 %v1894_v22  ;;  %1829 = vmatpush3.bf16.msra.mxu1 %v1894_v22 }
  0x3d   : > { %1763 = vmatprep.subr.bf16.mxu0 %v1895_v23  ;;  %1822 = vmatprep.subr.bf16.mxu1 %v1895_v23 }
  0x40   : > { %1764 = vmatpush3.bf16.msra.mxu0 %v1895_v23  ;;  %1830 = vmatpush3.bf16.msra.mxu1 %v1895_v23 }
  0x41   : > { %1765 = vmatprep.subr.bf16.mxu0 %v1896_v24  ;;  %1823 = vmatprep.subr.bf16.mxu1 %v1896_v24 }
  0x44   : > { %1766 = vmatpush3.bf16.msra.mxu0 %v1896_v24  ;;  %1831 = vmatpush3.bf16.msra.mxu1 %v1896_v24 }
  0x45   : > { %1767 = vmatprep.subr.bf16.mxu0 %v1897_v25  ;;  %1824 = vmatprep.subr.bf16.mxu1 %v1897_v25 }
  0x48   : > { %1768 = vmatpush3.bf16.msra.mxu0 %v1897_v25  ;;  %1832 = vmatpush3.bf16.msra.mxu1 %v1897_v25 }
  0x4b   : > { %1770 = vmatmul.mubr.bf16.vlgmr.msra.gmra.mrb[0].mxu0 %v1900_v26  ;;  %1778 = vmatmul.mubr.bf16.vlgmr.msra.gmra.mrb[0].mxu1 %v1901_v27 }
  0x4c   : > { %1773 = vmatprep.mubr.bf16.mxu0 %v1902_v28  ;;  %1781 = vmatprep.mubr.bf16.mxu1 %v1903_v29 }
  0x53   : > { %1774 = vmatmul.mubr.bf16.gmra.mrb[4].mxu0 %v1904_v30  ;;  %1782 = vmatmul.mubr.bf16.gmra.mrb[4].mxu1 %v1905_v31 }
 0x11e   : > { %v1771_v32 = vpop.f32.mrb[0].mxu0  ;;  %v2208_v33 = vpop.f32.mrb[0].mxu1 }
 0x11f   : > { %v627_v34 = vpop.f32.mrb[1].mxu0  ;;  %v659_v35 = vpop.f32.mrb[1].mxu1  ;;  %696 = vst [vmem:[#allocation2 + $0x10] sm:$0xff] (!%p1686_p10), %v1771_v32  ;;  %704 = vst [vmem:[#allocation2 + $0x50] sm:$0xff] (!%p1686_p10), %v2208_v33 }
 0x120   : > { %v1772_v36 = vpop.f32.mrb[2].mxu0  ;;  %v1780_v37 = vpop.f32.mrb[2].mxu1  ;;  %694 = vst [vmem:[#allocation2] sm:$0xff] (!%p1686_p10), %v627_v34  ;;  %702 = vst [vmem:[#allocation2 + $0x40] sm:$0xff] (!%p1686_p10), %v659_v35 }
 0x121   : > { %v630_v38 = vpop.f32.mrb[3].mxu0  ;;  %v662_v39 = vpop.f32.mrb[3].mxu1  ;;  %697 = vst [vmem:[#allocation2 + $0x18] sm:$0xff] (!%p1686_p10), %v1772_v36  ;;  %705 = vst [vmem:[#allocation2 + $0x58] sm:$0xff] (!%p1686_p10), %v1780_v37 }
 0x122   : > { %695 = vst [vmem:[#allocation2 + $0x8] sm:$0xff] (!%p1686_p10), %v630_v38  ;;  %703 = vst [vmem:[#allocation2 + $0x48] sm:$0xff] (!%p1686_p10), %v662_v39 }
 0x123   : > { %693 = sbr.rel (%p1686_p10) target bundleno = 299 (0x12b), region = 93 }
 0x126   : > { %v1775_v40 = vpop.f32.mrb[4].mxu0  ;;  %v2210_v41 = vpop.f32.mrb[4].mxu1 }
 0x127   : > { %v643_v42 = vpop.f32.mrb[5].mxu0  ;;  %v675_v43 = vpop.f32.mrb[5].mxu1  ;;  %700 = vst [vmem:[#allocation2 + $0x30] sm:$0xff] (!%p1686_p10), %v1775_v40  ;;  %708 = vst [vmem:[#allocation2 + $0x70] sm:$0xff] (!%p1686_p10), %v2210_v41 }
 0x128   : > { %v1776_v44 = vpop.f32.mrb[6].mxu0  ;;  %v2212_v45 = vpop.f32.mrb[6].mxu1  ;;  %698 = vst [vmem:[#allocation2 + $0x20] sm:$0xff] (!%p1686_p10), %v643_v42  ;;  %706 = vst [vmem:[#allocation2 + $0x60] sm:$0xff] (!%p1686_p10), %v675_v43 }
 0x129   : > { %v646_v46 = vpop.f32.mrb[7].mxu0  ;;  %v678_v47 = vpop.f32.mrb[7].mxu1  ;;  %701 = vst [vmem:[#allocation2 + $0x38] sm:$0xff] (!%p1686_p10), %v1776_v44  ;;  %709 = vst [vmem:[#allocation2 + $0x78] sm:$0xff] (!%p1686_p10), %v2212_v45 }
 0x12a   : > { %699 = vst [vmem:[#allocation2 + $0x28] sm:$0xff] %v646_v46  ;;  %707 = vst [vmem:[#allocation2 + $0x68] sm:$0xff] %v678_v47 }
 0x12b PF: > { %p1687_p11 = scmp.le.s32.totalorder %s2064_s29, 0 }
 0x12c   : > { %v714_v48 = vld [vmem:[#allocation2] sm:$0xff] (!%p1687_p11)  ;;  %v715_v49 = vld [vmem:[#allocation2 + $0x8] sm:$0xff] (!%p1687_p11)  ;;  %v716_v50 = vld [vmem:[#allocation2 + $0x10] sm:$0xff] (!%p1687_p11) }
 0x12d   : > { %713 = sbr.rel (%p1687_p11) target bundleno = 312 (0x138), region = 97  ;;  %v730_v51 = vadd.f32 (!%p1687_p11), %v714_v48, %v627_v34  ;;  %v731_v52 = vadd.f32 (!%p1687_p11), %v715_v49, %v630_v38  ;;  %v732_v53 = vadd.f32 (!%p1687_p11), %v1771_v32, %v716_v50  ;;  %v717_v54 = vld [vmem:[#allocation2 + $0x18] sm:$0xff] (!%p1687_p11)  ;;  %v722_v62 = vld [vmem:[#allocation2 + $0x40] sm:$0xff] (!%p1687_p11)  ;;  %v723_v2 = vld [vmem:[#allocation2 + $0x48] sm:$0xff] (!%p1687_p11) }
 0x12e   : > { %v733_v57 = vadd.f32 (!%p1687_p11), %v1772_v36, %v717_v54  ;;  %v738_v1 = vadd.f32 (!%p1687_p11), %v722_v62, %v659_v35  ;;  %v724_v3 = vld [vmem:[#allocation2 + $0x50] sm:$0xff] (!%p1687_p11)  ;;  %v725_v4 = vld [vmem:[#allocation2 + $0x58] sm:$0xff] (!%p1687_p11)  ;;  %v739_v5 = vadd.f32 (!%p1687_p11), %v723_v2, %v662_v39 }
 0x12f   : > { %v720_v60 = vld [vmem:[#allocation2 + $0x30] sm:$0xff] (!%p1687_p11)  ;;  %746 = vst [vmem:[#allocation2] sm:$0xff] (!%p1687_p11), %v730_v51  ;;  %747 = vst [vmem:[#allocation2 + $0x8] sm:$0xff] (!%p1687_p11), %v731_v52  ;;  %v740_v6 = vadd.f32 (!%p1687_p11), %v2208_v33, %v724_v3  ;;  %v741_v7 = vadd.f32 (!%p1687_p11), %v1780_v37, %v725_v4 }
 0x130   : > { %v718_v55 = vld [vmem:[#allocation2 + $0x20] sm:$0xff] (!%p1687_p11)  ;;  %748 = vst [vmem:[#allocation2 + $0x10] sm:$0xff] (!%p1687_p11), %v732_v53  ;;  %v736_v63 = vadd.f32 (!%p1687_p11), %v1775_v40, %v720_v60  ;;  %749 = vst [vmem:[#allocation2 + $0x18] sm:$0xff] (!%p1687_p11), %v733_v57  ;;  %v728_v10 = vld [vmem:[#allocation2 + $0x70] sm:$0xff] (!%p1687_p11) }
 0x131   : > { %v719_v56 = vld [vmem:[#allocation2 + $0x28] sm:$0xff] (!%p1687_p11)  ;;  %v734_v58 = vadd.f32 (!%p1687_p11), %v718_v55, %v643_v42  ;;  %v721_v61 = vld [vmem:[#allocation2 + $0x38] sm:$0xff] (!%p1687_p11)  ;;  %v726_v8 = vld [vmem:[#allocation2 + $0x60] sm:$0xff] (!%p1687_p11)  ;;  %754 = vst [vmem:[#allocation2 + $0x40] sm:$0xff] (!%p1687_p11), %v738_v1  ;;  %v744_v13 = vadd.f32 (!%p1687_p11), %v2210_v41, %v728_v10 }
 0x132   : > { %v735_v59 = vadd.f32 (!%p1687_p11), %v719_v56, %v646_v46  ;;  %v737_v0 = vadd.f32 (!%p1687_p11), %v1776_v44, %v721_v61  ;;  %v727_v9 = vld [vmem:[#allocation2 + $0x68] sm:$0xff] (!%p1687_p11)  ;;  %752 = vst [vmem:[#allocation2 + $0x30] sm:$0xff] (!%p1687_p11), %v736_v63  ;;  %v742_v11 = vadd.f32 (!%p1687_p11), %v726_v8, %v675_v43  ;;  %v729_v14 = vld [vmem:[#allocation2 + $0x78] sm:$0xff] (!%p1687_p11)  ;;  %755 = vst [vmem:[#allocation2 + $0x48] sm:$0xff] (!%p1687_p11), %v739_v5 }
 0x133   : > { %750 = vst [vmem:[#allocation2 + $0x20] sm:$0xff] (!%p1687_p11), %v734_v58  ;;  %v743_v12 = vadd.f32 (!%p1687_p11), %v727_v9, %v678_v47  ;;  %756 = vst [vmem:[#allocation2 + $0x50] sm:$0xff] (!%p1687_p11), %v740_v6  ;;  %v745_v15 = vadd.f32 (!%p1687_p11), %v2212_v45, %v729_v14 }
 0x134   : > { %751 = vst [vmem:[#allocation2 + $0x28] sm:$0xff] %v735_v59  ;;  %753 = vst [vmem:[#allocation2 + $0x38] sm:$0xff] %v737_v0 }
 0x135   : > { %757 = vst [vmem:[#allocation2 + $0x58] sm:$0xff] %v741_v7  ;;  %758 = vst [vmem:[#allocation2 + $0x60] sm:$0xff] %v742_v11 }
 0x136   : > { %759 = vst [vmem:[#allocation2 + $0x68] sm:$0xff] %v743_v12  ;;  %760 = vst [vmem:[#allocation2 + $0x70] sm:$0xff] %v744_v13 }
 0x137   : > { %761 = vst [vmem:[#allocation2 + $0x78] sm:$0xff] %v745_v15 }
 0x138 PF: > { %p1688_p12 = scmp.ne.s32.totalorder %s2064_s29, 1 }
 0x139   : > { %v1906_v16 = vld [vmem:[%s2840_s3] sm:$0xff] (!%p1688_p12)   ;;  %v1907_v17 = vld [vmem:[%s2840_s3 + $0x8] sm:$0xff] (!%p1688_p12)   ;;  %v1908_v18 = vld [vmem:[%s2840_s3 + $0x10] sm:$0xff] (!%p1688_p12)  }
 0x13a   : > { %765 = sbr.rel (%p1688_p12) target bundleno = 1144 (0x478), region = 101  ;;  %1785 = vmatprep.subr.bf16.mxu0 (!%p1688_p12), %v1906_v16  ;;  %v1909_v19 = vld [vmem:[%s2840_s3 + $0x18] sm:$0xff] (!%p1688_p12)   ;;  %v766_v20 = vld [vmem:[#allocation2] sm:$0xff] (!%p1688_p12)  ;;  %v767_v21 = vld [vmem:[#allocation2 + $0x8] sm:$0xff] (!%p1688_p12) }
 0x13b   : > { %1786 = vmatpush3.bf16.msra.mxu0 (!%p1688_p12), %v1906_v16  ;;  %v2238_v22 = vld [vmem:[%s2839_s2] ss:$0 sm:$0xff] (!%p1688_p12)  ;;  %v1911_v29 = vld [vmem:[%s2840_s3 + $0x28] sm:$0xff] (!%p1688_p12)   ;;  %v2257_v32 = vld [vmem:[%s2842_s5 + $0x14] ss:$8 sps:$4 sm:$0xff] (!%p1688_p12)  }
 0x13c   : > { %1787 = vmatprep.subr.bf16.mxu0 (!%p1688_p12), %v1907_v17  ;;  %v789_v23 = vadd.f32 (!%p1688_p12), %v2238_v22, %v766_v20  ;;  %v790_v24 = vadd.f32 (!%p1688_p12), %v2238_v22, %v767_v21  ;;  %v1910_v27 = vld [vmem:[%s2840_s3 + $0x20] sm:$0xff] (!%p1688_p12)   ;;  %v768_v33 = vld [vmem:[#allocation2 + $0x10] sm:$0xff] (!%p1688_p12)  ;;  %v769_v34 = vld [vmem:[#allocation2 + $0x18] sm:$0xff] (!%p1688_p12) }
 0x13d   : > { %v1916_v30 = vld [vmem:[%s2842_s5 + $0x4] ss:$8 sps:$4 sm:$0xff] (!%p1688_p12)   ;;  %v1914_v31 = vld [vmem:[%s2842_s5] ss:$8 sps:$4 sm:$0xff] (!%p1688_p12)   ;;  %v1912_v35 = vld [vmem:[%s2840_s3 + $0x30] sm:$0xff] (!%p1688_p12)   ;;  %v791_v40 = vadd.f32 (!%p1688_p12), %v2238_v22, %v768_v33  ;;  %v792_v41 = vadd.f32 (!%p1688_p12), %v2238_v22, %v769_v34  ;;  %v2074_v33 = vmov (!%p1688_p12), 0  }
 0x13e   : > { %v805_v25 = vmax.f32 (!%p1688_p12), %v789_v23, 0.0  ;;  %v806_v26 = vmax.f32 (!%p1688_p12), %v790_v24, 0.0  ;;  %1833 = vmatprep.subr.bf16.mxu1 (!%p1688_p12), %v1916_v30  ;;  %v770_v36 = vld [vmem:[#allocation2 + $0x20] sm:$0xff] (!%p1688_p12)  ;;  %v2266_v37 = vld [vmem:[%s2842_s5 + $0x10] ss:$8 sps:$4 sm:$0xff] (!%p1688_p12)   ;;  %v775_v55 = vld [vmem:[#allocation2 + $0x48] sm:$0xff] (!%p1688_p12)  ;;  %1197 = vmatprep.mubr.bf16.mxu1 (!%p1688_p12), %v2074_v33 }
 0x13f   : > { %1788 = vmatpush3.bf16.msra.mxu0 (!%p1688_p12), %v1907_v17  ;;  %1841 = vmatpush1.bf16.msra.mxu1 (!%p1688_p12), %v1914_v31  ;;  %v771_v38 = vld [vmem:[#allocation2 + $0x28] sm:$0xff] (!%p1688_p12)  ;;  %v793_v42 = vadd.f32 (!%p1688_p12), %v2238_v22, %v770_v36  ;;  %v1913_v45 = vld [vmem:[%s2840_s3 + $0x38] sm:$0xff] (!%p1688_p12)   ;;  %v807_v47 = vmax.f32 (!%p1688_p12), %v791_v40, 0.0  ;;  %v808_v48 = vmax.f32 (!%p1688_p12), %v792_v41, 0.0  ;;  %v772_v51 = vld [vmem:[#allocation2 + $0x30] sm:$0xff] (!%p1688_p12)  ;;  %v798_v62 = vadd.f32 (!%p1688_p12), %v2238_v22, %v775_v55 }
 0x140   : > { %1789 = vmatprep.subr.bf16.mxu0 (!%p1688_p12), %v1908_v18  ;;  %v821_v28 = vpack.c.bf16 (!%p1688_p12), %v806_v26, %v805_v25  ;;  %1834 = vmatprep.subr.bf16.mxu1 (!%p1688_p12), %v2257_v32  ;;  %v1922_v39 = vld [vmem:[%s2842_s5 + $0x24] ss:$8 sps:$4 sm:$0xff] (!%p1688_p12)   ;;  %v794_v43 = vadd.f32 (!%p1688_p12), %v2238_v22, %v771_v38  ;;  %v1920_v44 = vld [vmem:[%s2842_s5 + $0x20] ss:$8 sps:$4 sm:$0xff] (!%p1688_p12)   ;;  %v1925_v46 = vld [vmem:[%s2842_s5 + $0x34] ss:$8 sps:$4 sm:$0xff] (!%p1688_p12)   ;;  %v795_v58 = vadd.f32 (!%p1688_p12), %v2238_v22, %v772_v51 }
 0x141   : > { %v809_v49 = vmax.f32 %v793_v42, 0.0  ;;  %v773_v52 = vld [vmem:[#allocation2 + $0x38] sm:$0xff]  ;;  %v774_v54 = vld [vmem:[#allocation2 + $0x40] sm:$0xff]  ;;  %v822_v57 = vpack.c.bf16 %v808_v48, %v807_v47  ;;  %v814_v4 = vmax.f32 %v798_v62, 0.0  ;;  %v776_v5 = vld [vmem:[#allocation2 + $0x50] sm:$0xff] }
 0x142   : > { %1801 = vmatprep.mubr.bf16.mxu0 %v821_v28  ;;  %v810_v50 = vmax.f32 %v794_v43, 0.0  ;;  %v1923_v53 = vld [vmem:[%s2842_s5 + $0x30] ss:$8 sps:$4 sm:$0xff]   ;;  %v1928_v56 = vld [vmem:[%s2842_s5 + $0x44] ss:$8 sps:$4 sm:$0xff]   ;;  %v796_v59 = vadd.f32 %v2238_v22, %v773_v52  ;;  %v797_v61 = vadd.f32 %v2238_v22, %v774_v54  ;;  %v811_v1 = vmax.f32 %v795_v58, 0.0 }
 0x143   : > { %1790 = vmatpush3.bf16.msra.mxu0 %v1908_v18  ;;  %1842 = vmatpush1.bf16.msra.mxu1 %v2266_v37  ;;  %v1926_v63 = vld [vmem:[%s2842_s5 + $0x40] ss:$8 sps:$4 sm:$0xff]   ;;  %v1931_v0 = vld [vmem:[%s2842_s5 + $0x54] ss:$8 sps:$4 sm:$0xff]   ;;  %v1929_v7 = vld [vmem:[%s2842_s5 + $0x50] ss:$8 sps:$4 sm:$0xff]   ;;  %v799_v11 = vadd.f32 %v2238_v22, %v776_v5 }
 0x144   : > { %1791 = vmatprep.subr.bf16.mxu0 %v1909_v19  ;;  %1835 = vmatprep.subr.bf16.mxu1 %v1922_v39  ;;  %v823_v60 = vpack.c.bf16 %v810_v50, %v809_v49  ;;  %v812_v2 = vmax.f32 %v796_v59, 0.0  ;;  %v813_v3 = vmax.f32 %v797_v61, 0.0  ;;  %v777_v6 = vld [vmem:[#allocation2 + $0x58] sm:$0xff]  ;;  %v778_v8 = vld [vmem:[#allocation2 + $0x60] sm:$0xff]  ;;  %v779_v9 = vld [vmem:[#allocation2 + $0x68] sm:$0xff] }
 0x145   : > { %v800_v12 = vadd.f32 %v2238_v22, %v777_v6  ;;  %v801_v14 = vadd.f32 %v2238_v22, %v778_v8  ;;  %v802_v15 = vadd.f32 %v2238_v22, %v779_v9  ;;  %v815_v16 = vmax.f32 %v799_v11, 0.0  ;;  %v780_v20 = vld [vmem:[#allocation2 + $0x70] sm:$0xff]  ;;  %v781_v21 = vld [vmem:[#allocation2 + $0x78] sm:$0xff]  ;;  %v2329_v34 = vld [vmem:[%s2841_s4] ss:$0 sm:$0xff] }
 0x146   : > { %v824_v10 = vpack.c.bf16 %v812_v2, %v811_v1  ;;  %v825_v13 = vpack.c.bf16 %v814_v4, %v813_v3  ;;  %v803_v24 = vadd.f32 %v2238_v22, %v780_v20  ;;  %v804_v25 = vadd.f32 %v2238_v22, %v781_v21  ;;  %v1932_v22 = vld [vmem:[%s2842_s5 + $0x60] ss:$8 sps:$4 sm:$0xff]  }
 0x147   : > { %1792 = vmatpush3.bf16.msra.mxu0 %v1909_v19  ;;  %1843 = vmatpush1.bf16.msra.mxu1 %v1920_v44  ;;  %v816_v17 = vmax.f32 %v800_v12, 0.0  ;;  %v817_v18 = vmax.f32 %v801_v14, 0.0  ;;  %v818_v19 = vmax.f32 %v802_v15, 0.0 }
 0x148   : > { %1793 = vmatprep.subr.bf16.mxu0 %v1910_v27  ;;  %1836 = vmatprep.subr.bf16.mxu1 %v1925_v46  ;;  %v820_v28 = vmax.f32 %v804_v25, 0.0 }
 0x149   : > { %v826_v23 = vpack.c.bf16 %v816_v17, %v815_v16  ;;  %v827_v26 = vpack.c.bf16 %v818_v19, %v817_v18 }
 0x14b   : > { %1794 = vmatpush3.bf16.msra.mxu0 %v1910_v27  ;;  %1844 = vmatpush1.bf16.msra.mxu1 %v1923_v53  ;;  %v819_v27 = vmax.f32 %v803_v24, 0.0 }
 0x14c   : > { %1795 = vmatprep.subr.bf16.mxu0 %v1911_v29  ;;  %1837 = vmatprep.subr.bf16.mxu1 %v1928_v56 }
 0x14f   : > { %1796 = vmatpush3.bf16.msra.mxu0 %v1911_v29  ;;  %1845 = vmatpush1.bf16.msra.mxu1 %v1926_v63  ;;  %v828_v29 = vpack.c.bf16 %v820_v28, %v819_v27  ;;  %v1055_v28 = vlaneseq }
 0x150   : > { %1797 = vmatprep.subr.bf16.mxu0 %v1912_v35  ;;  %1838 = vmatprep.subr.bf16.mxu1 %v1931_v0 }
 0x153   : > { %1798 = vmatpush3.bf16.msra.mxu0 %v1912_v35  ;;  %1846 = vmatpush1.bf16.msra.mxu1 %v1929_v7 }
 0x154   : > { %1799 = vmatprep.subr.bf16.mxu0 %v1913_v45 }
 0x157   : > { %1800 = vmatpush3.bf16.msra.mxu0 %v1913_v45 }
 0x158   : > { %1145 = vmatprep.subr.bf16.mxu0 %v1916_v30  ;;  %v1934_v30 = vld [vmem:[%s2842_s5 + $0x64] ss:$8 sps:$4 sm:$0xff]  }
 0x159   : > { %1839 = vmatprep.subr.bf16.mxu1 %v1934_v30 }
 0x15a   : > { %1802 = vmatmul.mubr.bf16.vlgmr.msra.gmra.mrb[0].mxu0 %v822_v57  ;;  %1847 = vmatpush1.bf16.msra.mxu1 %v1932_v22 }
 0x15b   : > { %1805 = vmatprep.mubr.bf16.mxu0 %v823_v60  ;;  %1146 = vmatpush1.bf16.msra.mxu0 %v1914_v31  ;;  %v1937_v31 = vld [vmem:[%s2842_s5 + $0x74] ss:$8 sps:$4 sm:$0xff]  }
 0x15c   : > { %1147 = vmatprep.subr.bf16.mxu0 %v2257_v32  ;;  %v1935_v32 = vld [vmem:[%s2842_s5 + $0x70] ss:$8 sps:$4 sm:$0xff]   ;;  %1840 = vmatprep.subr.bf16.mxu1 %v1937_v31 }
 0x15e   : > { %1848 = vmatpush1.bf16.msra.mxu1 %v1935_v32 }
 0x15f   : > { %1148 = vmatpush1.bf16.msra.mxu0 %v2266_v37 }
 0x160   : > { %1149 = vmatprep.subr.bf16.mxu0 %v1922_v39 }
 0x162   : > { %1806 = vmatmul.mubr.bf16.gmra.mrb[4].mxu0 %v824_v10 }
 0x163   : > { %1809 = vmatprep.mubr.bf16.mxu0 %v825_v13  ;;  %1150 = vmatpush1.bf16.msra.mxu0 %v1920_v44 }
 0x164   : > { %1151 = vmatprep.subr.bf16.mxu0 %v1925_v46 }
 0x167   : > { %1152 = vmatpush1.bf16.msra.mxu0 %v1923_v53 }
 0x168   : > { %1153 = vmatprep.subr.bf16.mxu0 %v1928_v56 }
 0x16a   : > { %1810 = vmatmul.mubr.bf16.gmra.mrb[8].mxu0 %v826_v23 }
 0x16b   : > { %1813 = vmatprep.mubr.bf16.mxu0 %v827_v26  ;;  %1154 = vmatpush1.bf16.msra.mxu0 %v1926_v63 }
 0x16c   : > { %1155 = vmatprep.subr.bf16.mxu0 %v1931_v0 }
 0x16f   : > { %1156 = vmatpush1.bf16.msra.mxu0 %v1929_v7 }
 0x170   : > { %1157 = vmatprep.subr.bf16.mxu0 %v1934_v30 }
 0x172   : > { %1814 = vmatmul.mubr.bf16.gmra.mrb[12].mxu0 %v828_v29  ;;  %v2401_v29 = vshrl.u32 %v1055_v28, 7 }
 0x173   : > { %1158 = vmatpush1.bf16.msra.mxu0 %v1932_v22  ;;  %1177 = vmatprep.mubr.bf16.mxu0 %v2074_v33  ;;  %v2407_v22 = vld [vmem:[%s2843_s6] sm:$0x3] }
 0x174   : > { %1159 = vmatprep.subr.bf16.mxu0 %v1937_v31  ;;  %v1057_v30 = vsub.s32 0, %v2401_v29 }
 0x176   : > { %v2410_v31 = vrot.slane %v2407_v22, %v1057_v30 }
 0x177   : > { %1160 = vmatpush1.bf16.msra.mxu0 %v1935_v32 }
 0x22d   : > { %v1803_v35 = vpop.f32.mrb[0].mxu0 }
 0x22e   : > { %v943_v36 = vadd.f32 %v1803_v35, %v2329_v34  ;;  %v934_v37 = vpop.f32.mrb[1].mxu0 }
 0x22f   : > { %v935_v38 = vadd.f32 %v2329_v34, %v934_v37  ;;  %v1804_v39 = vpop.f32.mrb[2].mxu0 }
 0x230   : > { %v999_v40 = vmax.f32 %v943_v36, 0.0  ;;  %v946_v41 = vadd.f32 %v1804_v39, %v2329_v34  ;;  %v937_v42 = vpop.f32.mrb[3].mxu0 }
 0x231   : > { %v997_v43 = vmax.f32 %v935_v38, 0.0  ;;  %v938_v44 = vadd.f32 %v2329_v34, %v937_v42 }
 0x232   : > { %1015 = vst [vmem:[%s2844_s7 + $0x10] sm:$0xff] %v999_v40  ;;  %v1000_v45 = vmax.f32 %v946_v41, 0.0 }
 0x233   : > { %1013 = vst [vmem:[%s2844_s7] sm:$0xff] %v997_v43  ;;  %v998_v46 = vmax.f32 %v938_v44, 0.0 }
 0x234   : > { %1016 = vst [vmem:[%s2844_s7 + $0x18] sm:$0xff] %v1000_v45  ;;  %v1030_v47 = vpack.c.bf16 %v1000_v45, %v999_v40 }
 0x235   : > { %1014 = vst [vmem:[%s2844_s7 + $0x8] sm:$0xff] %v998_v46  ;;  %v1029_v48 = vpack.c.bf16 %v998_v46, %v997_v43  ;;  %v1807_v49 = vpop.f32.mrb[4].mxu0 }
 0x236   : > { %v959_v50 = vadd.f32 %v1807_v49, %v2329_v34  ;;  %v950_v51 = vpop.f32.mrb[5].mxu0 }
 0x237   : > { %v951_v52 = vadd.f32 %v2329_v34, %v950_v51  ;;  %v1808_v53 = vpop.f32.mrb[6].mxu0  ;;  %1178 = vmatmul.mubr.bf16.vlgmr.msra.gmra.mrb[16].mxu0 %v1029_v48 }
 0x238   : > { %v1003_v54 = vmax.f32 %v959_v50, 0.0  ;;  %v962_v55 = vadd.f32 %v1808_v53, %v2329_v34  ;;  %v953_v56 = vpop.f32.mrb[7].mxu0  ;;  %1187 = vmatprep.mubr.bf16.mxu0 %v2074_v33 }
 0x239   : > { %v1001_v57 = vmax.f32 %v951_v52, 0.0  ;;  %v954_v58 = vadd.f32 %v2329_v34, %v953_v56 }
 0x23a   : > { %1019 = vst [vmem:[%s2844_s7 + $0x30] sm:$0xff] %v1003_v54  ;;  %v1004_v59 = vmax.f32 %v962_v55, 0.0 }
 0x23b   : > { %1017 = vst [vmem:[%s2844_s7 + $0x20] sm:$0xff] %v1001_v57  ;;  %v1002_v60 = vmax.f32 %v954_v58, 0.0 }
 0x23c   : > { %1020 = vst [vmem:[%s2844_s7 + $0x38] sm:$0xff] %v1004_v59  ;;  %v1032_v61 = vpack.c.bf16 %v1004_v59, %v1003_v54 }
 0x23d   : > { %1018 = vst [vmem:[%s2844_s7 + $0x28] sm:$0xff] %v1002_v60  ;;  %v1031_v62 = vpack.c.bf16 %v1002_v60, %v1001_v57  ;;  %v1811_v63 = vpop.f32.mrb[8].mxu0 }
 0x23e   : > { %v975_v0 = vadd.f32 %v1811_v63, %v2329_v34  ;;  %v966_v1 = vpop.f32.mrb[9].mxu0 }
 0x23f   : > { %1188 = vmatmul.mubr.bf16.gmra.mrb[20].mxu0 %v1030_v47  ;;  %1198 = vmatmul.mubr.bf16.vlgmr.msra.gmra.mrb[0].mxu1 %v1031_v62  ;;  %v967_v2 = vadd.f32 %v2329_v34, %v966_v1  ;;  %v1812_v3 = vpop.f32.mrb[10].mxu0 }
 0x240   : > { %v1007_v4 = vmax.f32 %v975_v0, 0.0  ;;  %v978_v5 = vadd.f32 %v1812_v3, %v2329_v34  ;;  %v969_v6 = vpop.f32.mrb[11].mxu0  ;;  %1207 = vmatprep.mubr.bf16.mxu1 %v2074_v33 }
 0x241   : > { %v1005_v7 = vmax.f32 %v967_v2, 0.0  ;;  %v970_v8 = vadd.f32 %v2329_v34, %v969_v6 }
 0x242   : > { %1023 = vst [vmem:[%s2844_s7 + $0x50] sm:$0xff] %v1007_v4  ;;  %v1008_v9 = vmax.f32 %v978_v5, 0.0  ;;  %v1061_v5 = vsub.s32 1, %v2401_v29 }
 0x243   : > { %1021 = vst [vmem:[%s2844_s7 + $0x40] sm:$0xff] %v1005_v7  ;;  %v1006_v10 = vmax.f32 %v970_v8, 0.0 }
 0x244   : > { %1024 = vst [vmem:[%s2844_s7 + $0x58] sm:$0xff] %v1008_v9  ;;  %v1034_v11 = vpack.c.bf16 %v1008_v9, %v1007_v4 }
 0x245   : > { %1022 = vst [vmem:[%s2844_s7 + $0x48] sm:$0xff] %v1006_v10  ;;  %v1033_v12 = vpack.c.bf16 %v1006_v10, %v1005_v7  ;;  %v1815_v13 = vpop.f32.mrb[12].mxu0 }
 0x246   : > { %v991_v14 = vadd.f32 %v1815_v13, %v2329_v34  ;;  %v982_v15 = vpop.f32.mrb[13].mxu0 }
 0x247   : > { %1208 = vmatmul.mubr.bf16.gmra.mrb[4].mxu1 %v1032_v61  ;;  %v983_v16 = vadd.f32 %v2329_v34, %v982_v15  ;;  %v1816_v17 = vpop.f32.mrb[14].mxu0 }
 0x248   : > { %1217 = vmatprep.mubr.bf16.mxu1 %v2074_v33  ;;  %v1011_v18 = vmax.f32 %v991_v14, 0.0  ;;  %v994_v19 = vadd.f32 %v1816_v17, %v2329_v34  ;;  %v985_v20 = vpop.f32.mrb[15].mxu0 }
 0x249   : > { %v1009_v21 = vmax.f32 %v983_v16, 0.0  ;;  %v986_v23 = vadd.f32 %v2329_v34, %v985_v20 }
 0x24a   : > { %1027 = vst [vmem:[%s2844_s7 + $0x70] sm:$0xff] %v1011_v18  ;;  %v1012_v24 = vmax.f32 %v994_v19, 0.0 }
 0x24b   : > { %1025 = vst [vmem:[%s2844_s7 + $0x60] sm:$0xff] %v1009_v21  ;;  %v1010_v25 = vmax.f32 %v986_v23, 0.0 }
 0x24c   : > { %1028 = vst [vmem:[%s2844_s7 + $0x78] sm:$0xff] %v1012_v24  ;;  %v1036_v26 = vpack.c.bf16 %v1012_v24, %v1011_v18 }
 0x24d   : > { %1026 = vst [vmem:[%s2844_s7 + $0x68] sm:$0xff] %v1010_v25  ;;  %v1035_v27 = vpack.c.bf16 %v1010_v25, %v1009_v21 }
 0x24f   : > { %1218 = vmatmul.mubr.bf16.gmra.mrb[8].mxu1 %v1033_v12 }
 0x250   : > { %1227 = vmatprep.mubr.bf16.mxu1 %v2074_v33 }
 0x257   : > { %1228 = vmatmul.mubr.bf16.gmra.mrb[12].mxu1 %v1034_v11  ;;  %v1062_v11 = vrot.slane %v2407_v22, %v1061_v5 }
 0x258   : > { %1237 = vmatprep.mubr.bf16.mxu1 %v2074_v33 }
 0x25f   : > { %1238 = vmatmul.mubr.bf16.gmra.mrb[16].mxu1 %v1035_v27 }
 0x260   : > { %1247 = vmatprep.mubr.bf16.mxu1 %v2074_v33 }
 0x267   : > { %1248 = vmatmul.mubr.bf16.gmra.mrb[20].mxu1 %v1036_v26 }
 0x30a   : > { %v1179_v32 = vpop.f32.mrb[16].mxu0 }
 0x30b   : > { %v2413_v34 = vadd.f32 %v1179_v32, %v2410_v31  ;;  %v2415_v35 = vpop.f32.mrb[17].mxu0 }
 0x30c   : > { %v1183_v33 = vpop.f32.mrb[18].mxu0  ;;  %v2543_v13 = vadd.f32 %v2415_v35, %v1062_v11 }
 0x30d   : > { %1498 = vst [vmem:[%s2845_s8] sm:$0xff] %v2413_v34  ;;  %v2422_v36 = vadd.f32 %v1183_v33, %v2410_v31  ;;  %v2424_v37 = vpop.f32.mrb[19].mxu0  ;;  %1258 = vmax.xlane.f32.xlu0 %v2413_v34 }
 0x30e   : > { %v2549_v17 = vadd.f32 %v2424_v37, %v1062_v11  ;;  %v1402_v21 = vmul.f32 %v2543_v13, %v2543_v13 }
 0x30f   : > { %1499 = vst [vmem:[%s2845_s8 + $0x18] sm:$0xff] %v2422_v36 }
 0x310   : > { %v1403_v24 = vmul.f32 %v2549_v17, %v2549_v17 }
 0x311   : > { %1260 = vmax.xlane.f32.xlu0 %v2422_v36 }
 0x312   : > { %v1189_v38 = vpop.f32.mrb[20].mxu0  ;;  %v1199_v39 = vpop.f32.mrb[0].mxu1 }
 0x313   : > { %v2433_v40 = vadd.f32 %v1189_v38, %v2410_v31  ;;  %v2436_v41 = vadd.f32 %v1199_v39, %v2410_v31  ;;  %v2438_v42 = vpop.f32.mrb[21].mxu0  ;;  %v2440_v43 = vpop.f32.mrb[1].mxu1 }
 0x314   : > { %v1193_v44 = vpop.f32.mrb[22].mxu0  ;;  %v1203_v45 = vpop.f32.mrb[2].mxu1  ;;  %v2560_v20 = vadd.f32 %v2438_v42, %v1062_v11  ;;  %v2575_v25 = vadd.f32 %v2440_v43, %v1062_v11 }
 0x315   : > { %1500 = vst [vmem:[%s2845_s8 + $0x30] sm:$0xff] %v2433_v40  ;;  %1502 = vst [vmem:[%s2845_s8 + $0x60] sm:$0xff] %v2436_v41  ;;  %v2451_v46 = vadd.f32 %v1193_v44, %v2410_v31  ;;  %v2454_v47 = vadd.f32 %v1203_v45, %v2410_v31  ;;  %v2456_v48 = vpop.f32.mrb[23].mxu0  ;;  %v2458_v49 = vpop.f32.mrb[3].mxu1  ;;  %1262 = vmax.xlane.f32.xlu1 %v2433_v40  ;;  %1266 = vmax.xlane.f32.xlu0 %v2436_v41 }
 0x316   : > { %v2570_v23 = vadd.f32 %v2456_v48, %v1062_v11  ;;  %v1404_v26 = vmul.f32 %v2560_v20, %v2560_v20  ;;  %v2580_v27 = vadd.f32 %v2458_v49, %v1062_v11  ;;  %v1406_v30 = vmul.f32 %v2575_v25, %v2575_v25 }
 0x317   : > { %1501 = vst [vmem:[%s2845_s8 + $0x48] sm:$0xff] %v2451_v46  ;;  %1503 = vst [vmem:[%s2845_s8 + $0x78] sm:$0xff] %v2454_v47 }
 0x318   : > { %v1405_v28 = vmul.f32 %v2570_v23, %v2570_v23 }
 0x319   : > { %1264 = vmax.xlane.f32.xlu1 %v2451_v46 }
 0x31a   : > { %v1209_v50 = vpop.f32.mrb[4].mxu1 }
 0x31b   : > { %v2472_v51 = vadd.f32 %v1209_v50, %v2410_v31  ;;  %v2474_v52 = vpop.f32.mrb[5].mxu1 }
 0x31c   : > { %v1213_v53 = vpop.f32.mrb[6].mxu1  ;;  %v2585_v29 = vadd.f32 %v2474_v52, %v1062_v11 }
 0x31d   : > { %1504 = vst [vmem:[%s2845_s8 + $0x90] sm:$0xff] %v2472_v51  ;;  %v2481_v54 = vadd.f32 %v1213_v53, %v2410_v31  ;;  %v2483_v55 = vpop.f32.mrb[7].mxu1  ;;  %1268 = vmax.xlane.f32.xlu1 %v2454_v47  ;;  %1270 = vmax.xlane.f32.xlu0 %v2472_v51 }
 0x31e   : > { %v2590_v22 = vadd.f32 %v2483_v55, %v1062_v11  ;;  %v1408_v35 = vmul.f32 %v2585_v29, %v2585_v29 }
 0x31f   : > { %1505 = vst [vmem:[%s2845_s8 + $0xa8] sm:$0xff] %v2481_v54 }
 0x320   : > { %v1409_v37 = vmul.f32 %v2590_v22, %v2590_v22 }
 0x321   : > { %1272 = vmax.xlane.f32.xlu1 %v2481_v54 }
 0x322   : > { %v1219_v56 = vpop.f32.mrb[8].mxu1 }
 0x323   : > { %v2493_v57 = vadd.f32 %v1219_v56, %v2410_v31  ;;  %v1221_v58 = vpop.f32.mrb[9].mxu1 }
 0x324   : > { %v1223_v59 = vpop.f32.mrb[10].mxu1  ;;  %v2594_v32 = vadd.f32 %v1221_v58, %v1062_v11 }
 0x325   : > { %1506 = vst [vmem:[%s2845_s8 + $0xc0] sm:$0xff] %v2493_v57  ;;  %v2500_v60 = vadd.f32 %v1223_v59, %v2410_v31  ;;  %v1225_v61 = vpop.f32.mrb[11].mxu1  ;;  %1274 = vmax.xlane.f32.xlu0 %v2493_v57 }
 0x326   : > { %v2598_v33 = vadd.f32 %v1225_v61, %v1062_v11  ;;  %v1410_v39 = vmul.f32 %v2594_v32, %v2594_v32 }
 0x327   : > { %1507 = vst [vmem:[%s2845_s8 + $0xd8] sm:$0xff] %v2500_v60  ;;  %1276 = vmax.xlane.f32.xlu1 %v2500_v60 }
 0x328   : > { %v1411_v43 = vmul.f32 %v2598_v33, %v2598_v33 }
 0x32a   : > { %v1229_v62 = vpop.f32.mrb[12].mxu1 }
 0x32b   : > { %v2509_v63 = vadd.f32 %v1229_v62, %v2410_v31  ;;  %v1231_v0 = vpop.f32.mrb[13].mxu1 }
 0x32c   : > { %v1233_v1 = vpop.f32.mrb[14].mxu1  ;;  %v2602_v38 = vadd.f32 %v1231_v0, %v1062_v11 }
 0x32d   : > { %1508 = vst [vmem:[%s2845_s8 + $0xf0] sm:$0xff] %v2509_v63  ;;  %v2516_v2 = vadd.f32 %v1233_v1, %v2410_v31  ;;  %v1235_v3 = vpop.f32.mrb[15].mxu1  ;;  %1278 = vmax.xlane.f32.xlu0 %v2509_v63 }
 0x32e   : > { %v2606_v42 = vadd.f32 %v1235_v3, %v1062_v11  ;;  %v1412_v45 = vmul.f32 %v2602_v38, %v2602_v38 }
 0x32f   : > { %1509 = vst [vmem:[%s2845_s8 + $0x108] sm:$0xff] %v2516_v2  ;;  %1280 = vmax.xlane.f32.xlu1 %v2516_v2 }
 0x330   : > { %v1413_v49 = vmul.f32 %v2606_v42, %v2606_v42 }
 0x332   : > { %v1239_v4 = vpop.f32.mrb[16].mxu1 }
 0x333   : > { %v2526_v6 = vadd.f32 %v1239_v4, %v2410_v31  ;;  %v1241_v7 = vpop.f32.mrb[17].mxu1 }
 0x334   : > { %v1243_v8 = vpop.f32.mrb[18].mxu1  ;;  %v2610_v44 = vadd.f32 %v1241_v7, %v1062_v11 }
 0x335   : > { %1510 = vst [vmem:[%s2845_s8 + $0x120] sm:$0xff] %v2526_v6  ;;  %v2533_v9 = vadd.f32 %v1243_v8, %v2410_v31  ;;  %v1245_v10 = vpop.f32.mrb[19].mxu1  ;;  %1282 = vmax.xlane.f32.xlu0 %v2526_v6 }
 0x336   : > { %v2614_v48 = vadd.f32 %v1245_v10, %v1062_v11  ;;  %v1414_v52 = vmul.f32 %v2610_v44, %v2610_v44 }
 0x337   : > { %1511 = vst [vmem:[%s2845_s8 + $0x138] sm:$0xff] %v2533_v9  ;;  %1284 = vmax.xlane.f32.xlu1 %v2533_v9 }
 0x338   : > { %v1415_v55 = vmul.f32 %v2614_v48, %v2614_v48 }
 0x33a   : > { %v1249_v12 = vpop.f32.mrb[20].mxu1 }
 0x33b   : > { %v2546_v14 = vadd.f32 %v1249_v12, %v2410_v31  ;;  %v1251_v15 = vpop.f32.mrb[21].mxu1 }
 0x33c   : > { %v1253_v16 = vpop.f32.mrb[22].mxu1  ;;  %v2618_v50 = vadd.f32 %v1251_v15, %v1062_v11 }
 0x33d   : > { %1512 = vst [vmem:[%s2845_s8 + $0x150] sm:$0xff] %v2546_v14  ;;  %v2556_v18 = vadd.f32 %v1253_v16, %v2410_v31  ;;  %v1255_v19 = vpop.f32.mrb[23].mxu1  ;;  %1286 = vmax.xlane.f32.xlu0 %v2546_v14  ;;  %v1407_v31 = vmul.f32 %v2580_v27, %v2580_v27 }
 0x33e   : > { %v2622_v53 = vadd.f32 %v1255_v19, %v1062_v11  ;;  %v1416_v56 = vmul.f32 %v2618_v50, %v2618_v50 }
 0x33f   : > { %1513 = vst [vmem:[%s2845_s8 + $0x168] sm:$0xff] %v2556_v18  ;;  %1288 = vmax.xlane.f32.xlu1 %v2556_v18 }
 0x340   : > { %v1417_v58 = vmul.f32 %v2622_v53, %v2622_v53 }
 0x341   : > { %1418 = vadd.xlane.f32.xlu0 %v1402_v21 }
 0x343   : > { %1420 = vadd.xlane.f32.xlu1 %v1403_v24 }
 0x345   : > { %1422 = vadd.xlane.f32.xlu0 %v1404_v26 }
 0x347   : > { %1424 = vadd.xlane.f32.xlu1 %v1405_v28 }
 0x349   : > { %1426 = vadd.xlane.f32.xlu0 %v1406_v30 }
 0x34b   : > { %1428 = vadd.xlane.f32.xlu1 %v1407_v31 }
 0x34d   : > { %1430 = vadd.xlane.f32.xlu0 %v1408_v35 }
 0x34f   : > { %1432 = vadd.xlane.f32.xlu1 %v1409_v37 }
 0x351   : > { %1434 = vadd.xlane.f32.xlu0 %v1410_v39 }
 0x353   : > { %1436 = vadd.xlane.f32.xlu1 %v1411_v43 }
 0x355   : > { %1438 = vadd.xlane.f32.xlu0 %v1412_v45 }
 0x357   : > { %1440 = vadd.xlane.f32.xlu1 %v1413_v49 }
 0x359   : > { %1442 = vadd.xlane.f32.xlu0 %v1414_v52 }
 0x35b   : > { %1444 = vadd.xlane.f32.xlu1 %v1415_v55 }
 0x35d   : > { %1446 = vadd.xlane.f32.xlu0 %v1416_v56 }
 0x35f   : > { %1448 = vadd.xlane.f32.xlu1 %v1417_v58 }
 0x39a   : > { %v1259_v59 = vpop.xlane.xlu0 %1258 }
 0x39b   : > { %v1290_v61 = vsub.f32 %v2413_v34, %v1259_v59 }
 0x39d   : > { %v1306_v62 = vmul.f32 1.442695, %v1290_v61 }
 0x39e   : > { %v1261_v0 = vpop.xlane.xlu0 %1260 }
 0x39f   : > { %1938 = vpow2.f32 %v1306_v62  ;;  %v1291_v1 = vsub.f32 %v2422_v36, %v1261_v0 }
 0x3a1   : > { %v1308_v3 = vmul.f32 1.442695, %v1291_v1 }
 0x3a2   : > { %v1263_v4 = vpop.xlane.xlu1 %1262  ;;  %v1267_v5 = vpop.xlane.xlu0 %1266 }
 0x3a3   : > { %1940 = vpow2.f32 %v1308_v3  ;;  %v1292_v7 = vsub.f32 %v2433_v40, %v1263_v4  ;;  %v1294_v8 = vsub.f32 %v2436_v41, %v1267_v5 }
 0x3a5   : > { %v1310_v10 = vmul.f32 1.442695, %v1292_v7  ;;  %v1314_v11 = vmul.f32 1.442695, %v1294_v8 }
 0x3a6   : > { %v1265_v12 = vpop.xlane.xlu1 %1264 }
 0x3a7   : > { %1942 = vpow2.f32 %v1310_v10  ;;  %v1293_v15 = vsub.f32 %v2451_v46, %v1265_v12 }
 0x3a8   : > { %1944 = vpow2.f32 %v1314_v11 }
 0x3a9   : > { %v2635_v34 = vpop.eup %1938  ;;  %v1312_v16 = vmul.f32 1.442695, %v1293_v15 }
 0x3aa   : > { %v1269_v19 = vpop.xlane.xlu1 %1268  ;;  %1338 = vadd.xlane.f32.xlu0 %v2635_v34  ;;  %v1271_v36 = vpop.xlane.xlu0 %1270 }
 0x3ab   : > { %1946 = vpow2.f32 %v1312_v16  ;;  %v1295_v21 = vsub.f32 %v2454_v47, %v1269_v19  ;;  %v1296_v40 = vsub.f32 %v2472_v51, %v1271_v36 }
 0x3ad   : > { %v2640_v41 = vpop.eup %1940  ;;  %v1316_v24 = vmul.f32 1.442695, %v1295_v21  ;;  %v1318_v26 = vmul.f32 1.442695, %v1296_v40 }
 0x3ae   : > { %v1273_v28 = vpop.xlane.xlu1 %1272  ;;  %1340 = vadd.xlane.f32.xlu1 %v2640_v41 }
 0x3af   : > { %1948 = vpow2.f32 %v1316_v24  ;;  %v1297_v46 = vsub.f32 %v2481_v54, %v1273_v28 }
 0x3b0   : > { %1950 = vpow2.f32 %v1318_v26 }
 0x3b1   : > { %v2644_v30 = vpop.eup %1942  ;;  %v1320_v31 = vmul.f32 1.442695, %v1297_v46 }
 0x3b2   : > { %1342 = vadd.xlane.f32.xlu0 %v2644_v30  ;;  %v1275_v35 = vpop.xlane.xlu0 %1274  ;;  %v2648_v51 = vpop.eup %1944 }
 0x3b3   : > { %1952 = vpow2.f32 %v1320_v31  ;;  %v1298_v47 = vsub.f32 %v2493_v57, %v1275_v35 }
 0x3b4   : > { %v1277_v37 = vpop.xlane.xlu1 %1276 }
 0x3b5   : > { %v2650_v39 = vpop.eup %1946  ;;  %v1322_v43 = vmul.f32 1.442695, %v1298_v47  ;;  %v1299_v45 = vsub.f32 %v2500_v60, %v1277_v37 }
 0x3b6   : > { %1344 = vadd.xlane.f32.xlu1 %v2650_v39  ;;  %1346 = vadd.xlane.f32.xlu0 %v2648_v51 }
 0x3b7   : > { %1954 = vpow2.f32 %v1322_v43  ;;  %v1324_v54 = vmul.f32 1.442695, %v1299_v45 }
 0x3b9   : > { %v2655_v49 = vpop.eup %1948  ;;  %1956 = vpow2.f32 %v1324_v54 }
 0x3ba   : > { %v2657_v52 = vpop.eup %1950  ;;  %1348 = vadd.xlane.f32.xlu1 %v2655_v49  ;;  %v1279_v57 = vpop.xlane.xlu0 %1278 }
 0x3bb   : > { %1350 = vadd.xlane.f32.xlu0 %v2657_v52  ;;  %v1300_v55 = vsub.f32 %v2509_v63, %v1279_v57 }
 0x3bc   : > { %v1281_v56 = vpop.xlane.xlu1 %1280 }
 0x3bd   : > { %v2662_v60 = vpop.eup %1952  ;;  %v1326_v58 = vmul.f32 1.442695, %v1300_v55  ;;  %v1301_v59 = vsub.f32 %v2516_v2, %v1281_v56 }
 0x3be   : > { %1352 = vadd.xlane.f32.xlu1 %v2662_v60 }
 0x3bf   : > { %1958 = vpow2.f32 %v1326_v58  ;;  %v1328_v61 = vmul.f32 1.442695, %v1301_v59 }
 0x3c1   : > { %v2666_v62 = vpop.eup %1954  ;;  %1960 = vpow2.f32 %v1328_v61 }
 0x3c2   : > { %1354 = vadd.xlane.f32.xlu0 %v2666_v62  ;;  %v1283_v0 = vpop.xlane.xlu0 %1282 }
 0x3c3   : > { %v2669_v1 = vpop.eup %1956  ;;  %v1302_v63 = vsub.f32 %v2526_v6, %v1283_v0 }
 0x3c4   : > { %v1285_v3 = vpop.xlane.xlu1 %1284  ;;  %1356 = vadd.xlane.f32.xlu1 %v2669_v1 }
 0x3c5   : > { %v1330_v4 = vmul.f32 1.442695, %v1302_v63  ;;  %v1303_v2 = vsub.f32 %v2533_v9, %v1285_v3 }
 0x3c7   : > { %1962 = vpow2.f32 %v1330_v4  ;;  %v1332_v5 = vmul.f32 1.442695, %v1303_v2 }
 0x3c9   : > { %v2674_v7 = vpop.eup %1958  ;;  %1964 = vpow2.f32 %v1332_v5 }
 0x3ca   : > { %1358 = vadd.xlane.f32.xlu0 %v2674_v7  ;;  %v1287_v8 = vpop.xlane.xlu0 %1286 }
 0x3cb   : > { %v2677_v10 = vpop.eup %1960  ;;  %v1304_v11 = vsub.f32 %v2546_v14, %v1287_v8 }
 0x3cc   : > { %v1289_v12 = vpop.xlane.xlu1 %1288  ;;  %1360 = vadd.xlane.f32.xlu1 %v2677_v10 }
 0x3cd   : > { %v1334_v6 = vmul.f32 1.442695, %v1304_v11  ;;  %v1305_v15 = vsub.f32 %v2556_v18, %v1289_v12 }
 0x3ce   : > { %v1419_v16 = vpop.xlane.xlu0 %1418 }
 0x3cf   : > { %1966 = vpow2.f32 %v1334_v6  ;;  %v1336_v9 = vmul.f32 1.442695, %v1305_v15  ;;  %v1450_v19 = vmax.f32 %v1419_v16, 1e-24 }
 0x3d0   : > { %v1421_v36 = vpop.xlane.xlu1 %1420 }
 0x3d1   : > { %v2682_v21 = vpop.eup %1962  ;;  %1968 = vpow2.f32 %v1336_v9  ;;  %v1451_v40 = vmax.f32 %v1421_v36, 1e-24 }
 0x3d2   : > { %1970 = vrsqrt.f32 %v1450_v19  ;;  %1362 = vadd.xlane.f32.xlu0 %v2682_v21  ;;  %v1423_v24 = vpop.xlane.xlu0 %1422 }
 0x3d3   : > { %v2685_v14 = vpop.eup %1964  ;;  %1972 = vrsqrt.f32 %v1451_v40  ;;  %v1452_v26 = vmax.f32 %v1423_v24, 1e-24 }
 0x3d4   : > { %v1425_v28 = vpop.xlane.xlu1 %1424  ;;  %1364 = vadd.xlane.f32.xlu1 %v2685_v14 }
 0x3d5   : > { %1974 = vrsqrt.f32 %v1452_v26  ;;  %v1453_v18 = vmax.f32 %v1425_v28, 1e-24 }
 0x3d6   : > { %v1427_v46 = vpop.xlane.xlu0 %1426 }
 0x3d7   : > { %1976 = vrsqrt.f32 %v1453_v18  ;;  %v1454_v31 = vmax.f32 %v1427_v46, 1e-24 }
 0x3d8   : > { %v1429_v35 = vpop.xlane.xlu1 %1428 }
 0x3d9   : > { %v2688_v47 = vpop.eup %1966  ;;  %1978 = vrsqrt.f32 %v1454_v31  ;;  %v1455_v37 = vmax.f32 %v1429_v35, 1e-24 }
 0x3da   : > { %1366 = vadd.xlane.f32.xlu0 %v2688_v47  ;;  %v1431_v43 = vpop.xlane.xlu0 %1430 }
 0x3db   : > { %v2691_v45 = vpop.eup %1968  ;;  %1980 = vrsqrt.f32 %v1455_v37  ;;  %v1456_v54 = vmax.f32 %v1431_v43, 1e-24 }
 0x3dc   : > { %v1971_v57 = vpop.eup %1970  ;;  %v1433_v55 = vpop.xlane.xlu1 %1432  ;;  %1368 = vadd.xlane.f32.xlu1 %v2691_v45 }
 0x3dd   : > { %v1973_v56 = vpop.eup %1972  ;;  %v1482_v58 = vmul.f32 %v1971_v57, %v2543_v13  ;;  %1982 = vrsqrt.f32 %v1456_v54  ;;  %v1457_v59 = vmax.f32 %v1433_v55, 1e-24 }
 0x3de   : > { %v1483_v61 = vmul.f32 %v1973_v56, %v2549_v17  ;;  %v1435_v0 = vpop.xlane.xlu0 %1434 }
 0x3df   : > { %v1975_v63 = vpop.eup %1974  ;;  %1530 = vst [vmem:[%s2845_s8 + $0x10] sm:$0xff] %v1482_v58  ;;  %1984 = vrsqrt.f32 %v1457_v59  ;;  %v1458_v3 = vmax.f32 %v1435_v0, 1e-24 }
 0x3e0   : > { %1531 = vst [vmem:[%s2845_s8 + $0x28] sm:$0xff] %v1483_v61  ;;  %v1484_v4 = vmul.f32 %v1975_v63, %v2560_v20  ;;  %v1437_v2 = vpop.xlane.xlu1 %1436 }
 0x3e1   : > { %v1977_v13 = vpop.eup %1976  ;;  %1986 = vrsqrt.f32 %v1458_v3  ;;  %v1459_v5 = vmax.f32 %v1437_v2, 1e-24 }
 0x3e2   : > { %1532 = vst [vmem:[%s2845_s8 + $0x40] sm:$0xff] %v1484_v4  ;;  %v1485_v17 = vmul.f32 %v1977_v13, %v2570_v23  ;;  %v1439_v8 = vpop.xlane.xlu0 %1438 }
 0x3e3   : > { %v1979_v11 = vpop.eup %1978  ;;  %1988 = vrsqrt.f32 %v1459_v5  ;;  %v1460_v12 = vmax.f32 %v1439_v8, 1e-24 }
 0x3e4   : > { %1533 = vst [vmem:[%s2845_s8 + $0x58] sm:$0xff] %v1485_v17  ;;  %v1486_v20 = vmul.f32 %v1979_v11, %v2575_v25  ;;  %v1441_v6 = vpop.xlane.xlu1 %1440 }
 0x3e5   : > { %v1981_v15 = vpop.eup %1980  ;;  %1990 = vrsqrt.f32 %v1460_v12  ;;  %v1461_v16 = vmax.f32 %v1441_v6, 1e-24 }
 0x3e6   : > { %1534 = vst [vmem:[%s2845_s8 + $0x70] sm:$0xff] %v1486_v20  ;;  %v1487_v23 = vmul.f32 %v1981_v15, %v2580_v27  ;;  %v1443_v9 = vpop.xlane.xlu0 %1442 }
 0x3e7   : > { %v1983_v19 = vpop.eup %1982  ;;  %1992 = vrsqrt.f32 %v1461_v16  ;;  %v1462_v36 = vmax.f32 %v1443_v9, 1e-24 }
 0x3e8   : > { %1535 = vst [vmem:[%s2845_s8 + $0x88] sm:$0xff] %v1487_v23  ;;  %v1488_v25 = vmul.f32 %v1983_v19, %v2585_v29  ;;  %v1445_v40 = vpop.xlane.xlu1 %1444 }
 0x3e9   : > { %v1985_v24 = vpop.eup %1984  ;;  %1994 = vrsqrt.f32 %v1462_v36  ;;  %v1463_v26 = vmax.f32 %v1445_v40, 1e-24 }
 0x3ea   : > { %1536 = vst [vmem:[%s2845_s8 + $0xa0] sm:$0xff] %v1488_v25  ;;  %v1489_v27 = vmul.f32 %v1985_v24, %v2590_v22  ;;  %v1447_v28 = vpop.xlane.xlu0 %1446 }
 0x3eb   : > { %v1987_v18 = vpop.eup %1986  ;;  %1996 = vrsqrt.f32 %v1463_v26  ;;  %v1464_v46 = vmax.f32 %v1447_v28, 1e-24 }
 0x3ec   : > { %1537 = vst [vmem:[%s2845_s8 + $0xb8] sm:$0xff] %v1489_v27  ;;  %v1490_v29 = vmul.f32 %v1987_v18, %v2594_v32  ;;  %v1449_v31 = vpop.xlane.xlu1 %1448 }
 0x3ed   : > { %v1989_v35 = vpop.eup %1988  ;;  %1998 = vrsqrt.f32 %v1464_v46  ;;  %v1465_v37 = vmax.f32 %v1449_v31, 1e-24 }
 0x3ee   : > { %1538 = vst [vmem:[%s2845_s8 + $0xd0] sm:$0xff] %v1490_v29  ;;  %v1491_v22 = vmul.f32 %v1989_v35, %v2598_v33 }
 0x3ef   : > { %v1991_v43 = vpop.eup %1990  ;;  %2000 = vrsqrt.f32 %v1465_v37 }
 0x3f0   : > { %1539 = vst [vmem:[%s2845_s8 + $0xe8] sm:$0xff] %v1491_v22  ;;  %v1492_v54 = vmul.f32 %v1991_v43, %v2602_v38 }
 0x3f1   : > { %v1993_v57 = vpop.eup %1992 }
 0x3f2   : > { %1540 = vst [vmem:[%s2845_s8 + $0x100] sm:$0xff] %v1492_v54  ;;  %v1493_v32 = vmul.f32 %v1993_v57, %v2606_v42 }
 0x3f3   : > { %v1995_v55 = vpop.eup %1994 }
 0x3f4   : > { %1541 = vst [vmem:[%s2845_s8 + $0x118] sm:$0xff] %v1493_v32  ;;  %v1494_v33 = vmul.f32 %v1995_v55, %v2610_v44 }
 0x3f5   : > { %v1997_v56 = vpop.eup %1996 }
 0x3f6   : > { %1542 = vst [vmem:[%s2845_s8 + $0x130] sm:$0xff] %v1494_v33  ;;  %v1495_v38 = vmul.f32 %v1997_v56, %v2614_v48 }
 0x3f7   : > { %v1999_v58 = vpop.eup %1998 }
 0x3f8   : > { %1543 = vst [vmem:[%s2845_s8 + $0x148] sm:$0xff] %v1495_v38  ;;  %v1496_v42 = vmul.f32 %v1999_v58, %v2618_v50 }
 0x3f9   : > { %v2001_v59 = vpop.eup %2000 }
 0x3fa   : > { %1544 = vst [vmem:[%s2845_s8 + $0x160] sm:$0xff] %v1496_v42  ;;  %v1497_v44 = vmul.f32 %v2001_v59, %v2622_v53 }
 0x3fc   : > { %1545 = vst [vmem:[%s2845_s8 + $0x178] sm:$0xff] %v1497_v44 }
 0x437   : > { %v1339_v61 = vpop.xlane.xlu0 %1338 }
 0x438   : > { %2002 = vrcp.f32 %v1339_v61 }
 0x43b   : > { %v1341_v48 = vpop.xlane.xlu1 %1340 }
 0x43c   : > { %2004 = vrcp.f32 %v1341_v48 }
 0x43f   : > { %v1343_v0 = vpop.xlane.xlu0 %1342 }
 0x440   : > { %2006 = vrcp.f32 %v1343_v0 }
 0x442   : > { %v2003_v63 = vpop.eup %2002 }
 0x443   : > { %v1371_v50 = vmul.f32 %v2003_v63, %v2635_v34  ;;  %v1345_v3 = vpop.xlane.xlu1 %1344  ;;  %v1347_v4 = vpop.xlane.xlu0 %1346 }
 0x444   : > { %2008 = vrcp.f32 %v1345_v3 }
 0x445   : > { %1514 = vst [vmem:[%s2845_s8 + $0x8] sm:$0xff] %v1371_v50  ;;  %2010 = vrcp.f32 %v1347_v4 }
 0x446   : > { %v2005_v53 = vpop.eup %2004 }
 0x447   : > { %v1373_v2 = vmul.f32 %v2005_v53, %v2640_v41  ;;  %v1349_v13 = vpop.xlane.xlu1 %1348 }
 0x448   : > { %2012 = vrcp.f32 %v1349_v13  ;;  %v1351_v5 = vpop.xlane.xlu0 %1350 }
 0x449   : > { %1515 = vst [vmem:[%s2845_s8 + $0x20] sm:$0xff] %v1373_v2  ;;  %2014 = vrcp.f32 %v1351_v5 }
 0x44a   : > { %v2007_v34 = vpop.eup %2006 }
 0x44b   : > { %v1375_v17 = vmul.f32 %v2007_v34, %v2644_v30  ;;  %v1353_v8 = vpop.xlane.xlu1 %1352 }
 0x44c   : > { %2016 = vrcp.f32 %v1353_v8 }
 0x44d   : > { %1516 = vst [vmem:[%s2845_s8 + $0x38] sm:$0xff] %v1375_v17 }
 0x44e   : > { %v2009_v11 = vpop.eup %2008 }
 0x44f   : > { %v2011_v12 = vpop.eup %2010  ;;  %v1377_v41 = vmul.f32 %v2009_v11, %v2650_v39  ;;  %v1355_v20 = vpop.xlane.xlu0 %1354 }
 0x450   : > { %v1379_v6 = vmul.f32 %v2011_v12, %v2648_v51  ;;  %2018 = vrcp.f32 %v1355_v20 }
 0x451   : > { %1517 = vst [vmem:[%s2845_s8 + $0x50] sm:$0xff] %v1377_v41  ;;  %v1357_v15 = vpop.xlane.xlu1 %1356 }
 0x452   : > { %v2013_v30 = vpop.eup %2012  ;;  %1518 = vst [vmem:[%s2845_s8 + $0x68] sm:$0xff] %v1379_v6  ;;  %2020 = vrcp.f32 %v1357_v15 }
 0x453   : > { %v2015_v16 = vpop.eup %2014  ;;  %v1381_v23 = vmul.f32 %v2013_v30, %v2655_v49 }
 0x454   : > { %v1383_v39 = vmul.f32 %v2015_v16, %v2657_v52 }
 0x455   : > { %1519 = vst [vmem:[%s2845_s8 + $0x80] sm:$0xff] %v1381_v23 }
 0x456   : > { %v2017_v51 = vpop.eup %2016  ;;  %1520 = vst [vmem:[%s2845_s8 + $0x98] sm:$0xff] %v1383_v39 }
 0x457   : > { %v1385_v9 = vmul.f32 %v2017_v51, %v2662_v60  ;;  %v1359_v19 = vpop.xlane.xlu0 %1358 }
 0x458   : > { %2022 = vrcp.f32 %v1359_v19 }
 0x459   : > { %1521 = vst [vmem:[%s2845_s8 + $0xb0] sm:$0xff] %v1385_v9  ;;  %v1361_v49 = vpop.xlane.xlu1 %1360 }
 0x45a   : > { %v2019_v36 = vpop.eup %2018  ;;  %2024 = vrcp.f32 %v1361_v49 }
 0x45b   : > { %v1387_v52 = vmul.f32 %v2019_v36, %v2666_v62 }
 0x45c   : > { %v2021_v25 = vpop.eup %2020 }
 0x45d   : > { %1522 = vst [vmem:[%s2845_s8 + $0xc8] sm:$0xff] %v1387_v52  ;;  %v1389_v40 = vmul.f32 %v2021_v25, %v2669_v1 }
 0x45f   : > { %1523 = vst [vmem:[%s2845_s8 + $0xe0] sm:$0xff] %v1389_v40  ;;  %v1363_v60 = vpop.xlane.xlu0 %1362 }
 0x460   : > { %2026 = vrcp.f32 %v1363_v60 }
 0x461   : > { %v1365_v24 = vpop.xlane.xlu1 %1364 }
 0x462   : > { %v2023_v26 = vpop.eup %2022  ;;  %2028 = vrcp.f32 %v1365_v24 }
 0x463   : > { %v1391_v27 = vmul.f32 %v2023_v26, %v2674_v7 }
 0x464   : > { %v2025_v28 = vpop.eup %2024 }
 0x465   : > { %1524 = vst [vmem:[%s2845_s8 + $0xf8] sm:$0xff] %v1391_v27  ;;  %v1393_v62 = vmul.f32 %v2025_v28, %v2677_v10 }
 0x467   : > { %1525 = vst [vmem:[%s2845_s8 + $0x110] sm:$0xff] %v1393_v62  ;;  %v1367_v1 = vpop.xlane.xlu0 %1366 }
 0x468   : > { %2030 = vrcp.f32 %v1367_v1 }
 0x469   : > { %v1369_v18 = vpop.xlane.xlu1 %1368 }
 0x46a   : > { %v2027_v46 = vpop.eup %2026  ;;  %2032 = vrcp.f32 %v1369_v18 }
 0x46b   : > { %v1395_v29 = vmul.f32 %v2027_v46, %v2682_v21 }
 0x46c   : > { %v2029_v31 = vpop.eup %2028 }
 0x46d   : > { %1526 = vst [vmem:[%s2845_s8 + $0x128] sm:$0xff] %v1395_v29  ;;  %v1397_v7 = vmul.f32 %v2029_v31, %v2685_v14 }
 0x46f   : > { %1527 = vst [vmem:[%s2845_s8 + $0x140] sm:$0xff] %v1397_v7 }
 0x472   : > { %v2031_v10 = vpop.eup %2030 }
 0x473   : > { %v1399_v35 = vmul.f32 %v2031_v10, %v2688_v47 }
 0x474   : > { %v2033_v37 = vpop.eup %2032 }
 0x475   : > { %1528 = vst [vmem:[%s2845_s8 + $0x158] sm:$0xff] %v1399_v35  ;;  %v1401_v21 = vmul.f32 %v2033_v37, %v2691_v45 }
 0x477   : > { %1529 = vst [vmem:[%s2845_s8 + $0x170] sm:$0xff] %v1401_v21 }
 0x478 PF: > { %s19_s9 = sadd.s32 1, %s2072_s9   ;;  %s2846_s27 = smov %s2060_s28 }
 0x479   : > { %p16_p13 = scmp.ge.s32.totalorder %s19_s9, 4   ;;  %s2847_s28 = smov %s2155_s13 }
 0x47a   : > { %s2848_s29 = smov %s2068_s30  ;;  %s2849_s30 = smov %s2851_s10 }
 0x47b   :  { %18 = sbr.rel (!%p16_p13) target bundleno = 3 (0x3), region = 151 }

</bundles_post_ra>
